<compile_context>
chip_gen: v7x
topology: tpu7x:2x2x1
jax: 0.10.0
libtpu: 0.0.40
codegen_flags: <defaults>
</compile_context>

<pallas_src>
import functools
import math

import jax
import jax.numpy as jnp
from jax import lax
from jax.experimental import pallas as pl
from jax.experimental.pallas import tpu as pltpu

_EPS = 1e-5                       # BatchNorm eps
_VMEM_LIMIT = 48 * 1024 * 1024    # scoped-VMEM limit (safe on v5e/v6e/v7x)
_VMEM_BUDGET = 36 * 1024 * 1024   # planning budget for tile selection
_MIN_PALLAS_M = 128               # below this, jnp.dot beats the launch cost


def _round_up(x, m):
    return (x + m - 1) // m * m


# --------------------------------------------------------------------------
# Pallas GEMM kernel: weight-resident, fused bias / residual / ReLU epilogue
# --------------------------------------------------------------------------

def _mm_kernel(*refs, relu, has_res):
    """out = maybe_relu(A @ B + bias [+ residual]); full-K dot, f32 accum."""
    if has_res:
        a_ref, b_ref, bias_ref, res_ref, o_ref = refs
    else:
        a_ref, b_ref, bias_ref, o_ref = refs
        res_ref = None
    y = jnp.dot(a_ref[...], b_ref[...], preferred_element_type=jnp.float32)
    y = y + bias_ref[...]
    if has_res:
        y = y + res_ref[...].astype(jnp.float32)
    if relu:
        y = jnp.maximum(y, 0.0)
    o_ref[...] = y.astype(o_ref.dtype)


@functools.lru_cache(maxsize=None)
def _get_mm_call(Mp, Kp, Np, tm, relu, has_res, out_dtype):
    grid = (Mp // tm,)
    in_specs = [
        pl.BlockSpec((tm, Kp), lambda i: (i, 0)),   # activation streams over M
        pl.BlockSpec((Kp, Np), lambda i: (0, 0)),   # weight: VMEM-resident
        pl.BlockSpec((1, Np), lambda i: (0, 0)),    # bias
    ]
    if has_res:
        in_specs.append(pl.BlockSpec((tm, Np), lambda i: (i, 0)))
    bytes_accessed = (2 * Mp * Kp + 2 * Kp * Np + 2 * Mp * Np + 4 * Np
                      + (2 * Mp * Np if has_res else 0))
    return pl.pallas_call(
        functools.partial(_mm_kernel, relu=relu, has_res=has_res),
        out_shape=jax.ShapeDtypeStruct((Mp, Np), out_dtype),
        grid_spec=pltpu.PrefetchScalarGridSpec(
            num_scalar_prefetch=0,
            grid=grid,
            in_specs=in_specs,
            out_specs=pl.BlockSpec((tm, Np), lambda i: (i, 0))),
        compiler_params=pltpu.CompilerParams(
            dimension_semantics=("parallel",),
            vmem_limit_bytes=_VMEM_LIMIT),
        cost_estimate=pl.CostEstimate(flops=2 * Mp * Kp * Np,
                                      transcendentals=0,
                                      bytes_accessed=bytes_accessed),
    )


def _choose_tm(Mp, Kp, Np, has_res):
    """Largest multiple-of-16 divisor of Mp that fits VMEM; keep grid >= 2."""
    per_row = 4 * Kp + 4 * Np + (4 * Np if has_res else 0)  # dbl-buffered bf16
    fixed = 4 * Kp * Np + 4 * Np                             # weight(x2) + bias
    cap = max(16, (_VMEM_BUDGET - fixed) // per_row)
    cap = min(cap, 1024, Mp)
    if Mp >= 128:
        # >= 2 blocks on the parallel axis so both v7x TensorCores get work.
        cap = min(cap, max(64, Mp // 2))
    tm, c = 16, 16
    while c <= cap:
        if Mp % c == 0:
            tm = c
        c += 16
    return tm


def fused_matmul(a, wp, relu, out_dtype=jnp.bfloat16, residual=None):
    """a:(M,K) @ packed weight, fused bias / residual / ReLU epilogue.

    Output keeps the 128-padded channel width (pad columns are exactly 0)."""
    M, K = a.shape
    Kp, Np = wp["w"].shape
    a = a.astype(jnp.bfloat16)
    if residual is not None:
        residual = residual.astype(jnp.bfloat16)

    weight_vmem = 4 * Kp * Np + 4 * Np
    if M < _MIN_PALLAS_M or weight_vmem + 16 * (4 * Kp + 8 * Np) > _VMEM_BUDGET:
        # Tiny-M GEMMs (or a weight that can't be VMEM-resident): the
        # pallas_call launch/pad overhead would dominate -> let XLA handle it.
        y = jnp.dot(a, wp["w"][:K], preferred_element_type=jnp.float32)
        y = y + wp["b"]
        if residual is not None:
            y = y + residual.astype(jnp.float32)
        if relu:
            y = jnp.maximum(y, 0.0)
        return y.astype(out_dtype)

    Mp = _round_up(M, 16)
    tm = _choose_tm(Mp, Kp, Np, residual is not None)
    if (Mp, Kp) != (M, K):
        a = jnp.pad(a, ((0, Mp - M), (0, Kp - K)))
    args = [a, wp["w"], wp["b"]]
    if residual is not None:
        if residual.shape != (Mp, Np):
            residual = jnp.pad(residual, ((0, Mp - residual.shape[0]),
                                          (0, Np - residual.shape[1])))
        args.append(residual)
    out = _get_mm_call(Mp, Kp, Np, tm, bool(relu), residual is not None,
                       out_dtype)(*args)
    if Mp != M:
        out = out[:M]
    return out


# --------------------------------------------------------------------------
# Conv / pooling wrappers (glue in plain JAX under jit, GEMM in Pallas)
# --------------------------------------------------------------------------

def _im2col(x, kh, kw, stride, padding):
    # TODO(synk): folding the kh*kw window walk directly into the Pallas GEMM
    # K-axis (or allow_input_fusion on the A operand) would remove the HBM
    # round-trip of the patch matrix; it is materialized in bf16 instead.
    n, h, w, c = x.shape
    xp = jnp.pad(x, ((0, 0), (padding, padding), (padding, padding), (0, 0)))
    ho = (h + 2 * padding - kh) // stride + 1
    wo = (w + 2 * padding - kw) // stride + 1
    cols = [lax.slice(xp, (0, i, j, 0),
                      (n, i + stride * (ho - 1) + 1,
                       j + stride * (wo - 1) + 1, c),
                      (1, stride, stride, 1))
            for i in range(kh) for j in range(kw)]
    return jnp.concatenate(cols, axis=-1), ho, wo


def conv2d_bn(x, wp, stride=1, padding=0, relu=True,
              out_dtype=jnp.bfloat16, residual=None):
    """Conv (no bias) + folded eval-mode BN (+ fused residual add) (+ ReLU).

    Input/output activations carry channels padded to a multiple of 128."""
    n, h, w, c = x.shape
    kh, kw = wp["kh"], wp["kw"]
    if kh == 1 and kw == 1:
        if stride > 1:
            x = x[:, ::stride, ::stride, :]
        ho, wo = x.shape[1], x.shape[2]
        a = x.reshape(n * ho * wo, c)
    else:
        cols, ho, wo = _im2col(x, kh, kw, stride, padding)
        a = cols.reshape(n * ho * wo, kh * kw * c)
    res2d = None
    if residual is not None:
        res2d = residual.reshape(n * ho * wo, residual.shape[-1])
    y = fused_matmul(a, wp, relu, out_dtype, res2d)
    return y.reshape(n, ho, wo, y.shape[-1])


def maxpool2d(x, k=3, stride=2, padding=1):
    """3x3/s2 max pool as a k*k shifted-slice maximum tree."""
    n, h, w, c = x.shape
    xp = jnp.pad(x, ((0, 0), (padding, padding), (padding, padding), (0, 0)),
                 constant_values=-jnp.inf)
    ho = (h + 2 * padding - k) // stride + 1
    wo = (w + 2 * padding - k) // stride + 1
    out = None
    for i in range(k):
        for j in range(k):
            sl = lax.slice(xp, (0, i, j, 0),
                           (n, i + stride * (ho - 1) + 1,
                            j + stride * (wo - 1) + 1, c),
                           (1, stride, stride, 1))
            out = sl if out is None else jnp.maximum(out, sl)
    return out


# --------------------------------------------------------------------------
# Parameter init (deterministic, kaiming-style) with weight packing
# --------------------------------------------------------------------------

def _kaiming_conv(key, kh, kw, cin, cout):
    fan_in = kh * kw * cin
    std = math.sqrt(2.0 / fan_in)
    return std * jax.random.normal(key, (kh, kw, cin, cout), jnp.float32)


def _bn_scale(c, gamma=None):
    # Eval-mode BN with running_mean=0, running_var=1 folded into a scale.
    g = jnp.ones((c,), jnp.float32) if gamma is None else gamma
    return g / math.sqrt(1.0 + _EPS)


def _pack_conv(w4d, scale, bias, pad_cin=True):
    """Fold BN scale, pad cin/cout to carried 128-multiples, pre-cast bf16."""
    kh, kw, cin, cout = w4d.shape
    w4d = w4d.astype(jnp.float32) * scale.astype(jnp.float32)[None, None, None, :]
    cin_p = _round_up(cin, 128) if pad_cin else cin
    if cin_p != cin:
        w4d = jnp.pad(w4d, ((0, 0), (0, 0), (0, cin_p - cin), (0, 0)))
    K = kh * kw * cin_p
    Kp = _round_up(K, 128)
    Np = _round_up(cout, 128)
    w2d = jnp.pad(w4d.reshape(K, cout), ((0, Kp - K), (0, Np - cout)))
    b_p = jnp.pad(bias.astype(jnp.float32), (0, Np - cout)).reshape(1, Np)
    return {"w": w2d.astype(jnp.bfloat16), "b": b_p, "kh": kh, "kw": kw,
            "N": cout}


def _pack_linear(w2d, bias, scale=None):
    """Head matmuls stay in f32 (precision + they bypass Pallas anyway)."""
    w = w2d.astype(jnp.float32)
    if scale is not None:
        w = w * scale.astype(jnp.float32)[None, :]
    return {"w": w, "b": bias.astype(jnp.float32)}


def linear_f32(x, p, relu=False):
    y = jnp.dot(x, p["w"], preferred_element_type=jnp.float32) + p["b"]
    return jnp.maximum(y, 0.0) if relu else y


def _init_bottleneck(key, inplanes, planes, stride, with_downsample):
    k = jax.random.split(key, 4)
    exp = planes * 4
    zeros = lambda c: jnp.zeros((c,), jnp.float32)
    p = {
        "stride": stride,
        "c1": _pack_conv(_kaiming_conv(k[0], 1, 1, inplanes, planes),
                         _bn_scale(planes), zeros(planes)),
        "c2": _pack_conv(_kaiming_conv(k[1], 3, 3, planes, planes),
                         _bn_scale(planes), zeros(planes)),
        "c3": _pack_conv(_kaiming_conv(k[2], 1, 1, planes, exp),
                         _bn_scale(exp), zeros(exp)),
    }
    if with_downsample:
        p["cd"] = _pack_conv(_kaiming_conv(k[3], 1, 1, inplanes, exp),
                             _bn_scale(exp), zeros(exp))
    return p


def _init_layer(key, inplanes, planes, blocks, stride):
    ks = jax.random.split(key, blocks)
    params = [_init_bottleneck(ks[0], inplanes, planes, stride, True)]
    for i in range(1, blocks):
        params.append(_init_bottleneck(ks[i], planes * 4, planes, 1, False))
    return params


def _run_bottleneck(x, p):
    out = conv2d_bn(x, p["c1"], 1, 0, relu=True)
    out = conv2d_bn(out, p["c2"], p["stride"], 1, relu=True)
    if "cd" in p:
        identity = conv2d_bn(x, p["cd"], p["stride"], 0, relu=False)
    else:
        identity = x
    # conv3 + BN3 + residual add + ReLU fused into one Pallas GEMM epilogue.
    return conv2d_bn(out, p["c3"], 1, 0, relu=True, residual=identity)


def init_bfe_params(key, num_classes=80, stride=1,
                    global_feature_dim=512, part_feature_dim=1024):
    ks = jax.random.split(key, 12)
    zeros = lambda c: jnp.zeros((c,), jnp.float32)
    p = {}
    # TODO(synk): pretrained ImageNet ResNet-50 weights cannot be loaded here;
    # a deterministic kaiming-style init with eval-mode BN stats (mean=0,var=1)
    # is used instead.
    p["conv1"] = _pack_conv(_kaiming_conv(ks[0], 7, 7, 3, 64),
                            _bn_scale(64), zeros(64), pad_cin=False)
    p["layer1"] = _init_layer(ks[1], 64, 64, 3, 1)
    p["layer2"] = _init_layer(ks[2], 256, 128, 4, 2)
    p["layer3"] = _init_layer(ks[3], 512, 256, 6, 2)
    p["layer4"] = _init_layer(ks[4], 1024, 512, 3, stride)
    p["bottleneck"] = _init_bottleneck(ks[5], 2048, 512, 1, False)

    # global_reduction: Conv2d(2048, gdim, 1) + BN + ReLU (weights_init_kaiming)
    gr_gamma = 1.0 + 0.02 * jax.random.normal(ks[7], (global_feature_dim,),
                                              jnp.float32)
    p["gr"] = _pack_linear(
        _kaiming_conv(ks[6], 1, 1, 2048, global_feature_dim).reshape(
            2048, global_feature_dim),
        zeros(global_feature_dim), _bn_scale(global_feature_dim, gr_gamma))
    # global_softmax: Linear(gdim, num_classes), kaiming fan_out, bias=0
    p["gsm"] = _pack_linear(
        math.sqrt(2.0 / num_classes) *
        jax.random.normal(ks[8], (global_feature_dim, num_classes), jnp.float32),
        zeros(num_classes))

    # part_reduction / part_softmax
    pr_gamma = 1.0 + 0.02 * jax.random.normal(ks[10], (part_feature_dim,),
                                              jnp.float32)
    p["pr"] = _pack_linear(
        _kaiming_conv(ks[9], 1, 1, 2048, part_feature_dim).reshape(
            2048, part_feature_dim),
        zeros(part_feature_dim), _bn_scale(part_feature_dim, pr_gamma))
    p["psm"] = _pack_linear(
        math.sqrt(2.0 / num_classes) *
        jax.random.normal(ks[11], (part_feature_dim, num_classes), jnp.float32),
        zeros(num_classes))
    return p


# --------------------------------------------------------------------------
# Forward pass (eval mode)
# --------------------------------------------------------------------------

def bfe_forward(x_nchw, params):
    """Eval-mode BFE forward. Returns (predict, triplet_features, softmax_features)."""
    x = jnp.transpose(x_nchw, (0, 2, 3, 1)).astype(jnp.bfloat16)  # NCHW -> NHWC

    # backbone: conv1 / bn1 / relu / maxpool / layer1..3, then layer4
    x = conv2d_bn(x, params["conv1"], stride=2, padding=3, relu=True)
    x = maxpool2d(x, 3, 2, 1)
    for blk in params["layer1"]:
        x = _run_bottleneck(x, blk)
    for blk in params["layer2"]:
        x = _run_bottleneck(x, blk)
    for blk in params["layer3"]:
        x = _run_bottleneck(x, blk)
    for blk in params["layer4"]:
        x = _run_bottleneck(x, blk)

    # global branch: adaptive avg pool -> 1x1 conv reduction (f32) -> linear
    glob = jnp.mean(x.astype(jnp.float32), axis=(1, 2))        # (N, 2048)
    gfeat = linear_f32(glob, params["gr"], relu=True)          # .squeeze()
    g_logits = linear_f32(gfeat, params["gsm"])

    # part branch: extra Bottleneck -> BatchDrop -> adaptive max pool -> reduction
    xb = _run_bottleneck(x, params["bottleneck"])
    # TODO(synk): training-mode BatchDrop (random rectangular zero mask via
    # python random) is not implemented; eval-mode identity semantics used.
    part = jnp.max(xb.astype(jnp.float32), axis=(1, 2))        # (N, 2048)
    pfeat = linear_f32(part, params["pr"], relu=True)          # .squeeze()
    p_logits = linear_f32(pfeat, params["psm"])

    predict = jnp.concatenate([gfeat, pfeat], axis=-1)         # torch.cat(predict, -1)
    return predict, (gfeat, pfeat), (g_logits, p_logits)


if __name__ == "__main__":
    key = jax.random.PRNGKey(0)
    pkey, xkey = jax.random.split(key)
    params = init_bfe_params(pkey, num_classes=80)
    # small NCHW image batch, like the PyTorch module's input
    x = jax.random.normal(xkey, (2, 3, 32, 32), jnp.float32)

    # params are closed over (trace-time constants) so static tiling metadata
    # inside the packed weights stays Python ints under jit.
    fwd = jax.jit(lambda inp: bfe_forward(inp, params))

    predict, (gfeat, pfeat), (g_logits, p_logits) = fwd(x)
    jax.block_until_ready((predict, gfeat, pfeat, g_logits, p_logits))

    assert predict.shape == (2, 512 + 1024)
    assert gfeat.shape == (2, 512) and pfeat.shape == (2, 1024)
    assert g_logits.shape == (2, 80) and p_logits.shape == (2, 80)
    assert bool(jnp.all(jnp.isfinite(predict)))
    assert bool(jnp.all(jnp.isfinite(g_logits)))
    assert bool(jnp.all(jnp.isfinite(p_logits)))
    print("KERNEL_OK")
</pallas_src>

<mosaic_0001>
module attributes {stable_mosaic.version = 11 : i64} {
  func.func @_mm_kernel(%arg0: i32, %arg1: memref<256x256xbf16, #tpu.memory_space<vmem>>, %arg2: memref<256x128xbf16, #tpu.memory_space<vmem>>, %arg3: memref<1x128xf32, #tpu.memory_space<vmem>>, %arg4: memref<256x128xbf16, #tpu.memory_space<vmem>>) attributes {dimension_semantics = [#tpu.dimension_semantics<parallel>], iteration_bounds = array<i64: 2>, scalar_prefetch = 0 : i64, scratch_operands = 0 : i64, tpu.core_type = #tpu.core_type<tc>, window_params = [{transform_indices = @transform_0, window_bounds = array<i64: 256, 256>}, {pipeline_mode = #tpu.pipeline_mode<synchronous>, transform_indices = @transform_1, window_bounds = array<i64: 256, 128>}, {pipeline_mode = #tpu.pipeline_mode<synchronous>, transform_indices = @transform_2, window_bounds = array<i64: 1, 128>}, {transform_indices = @transform_3, window_bounds = array<i64: 256, 128>}]} {
    %c0 = arith.constant 0 : index
    %c0_0 = arith.constant 0 : index
    %0 = vector.load %arg1[%c0, %c0_0] : memref<256x256xbf16, #tpu.memory_space<vmem>>, vector<256x256xbf16>
    %c0_1 = arith.constant 0 : index
    %c0_2 = arith.constant 0 : index
    %1 = vector.load %arg2[%c0_1, %c0_2] : memref<256x128xbf16, #tpu.memory_space<vmem>>, vector<256x128xbf16>
    %cst = arith.constant dense<0.000000e+00> : vector<256x128xf32>
    %2 = tpu.matmul %0, %1, %cst {dimension_numbers = #tpu.dot_dimension_numbers<[1], [0], [0], [1], [0, 0, 1, 1], [], []>} : vector<256x256xbf16>, vector<256x128xbf16>, vector<256x128xf32> -> vector<256x128xf32>
    %c0_3 = arith.constant 0 : index
    %c0_4 = arith.constant 0 : index
    %3 = vector.load %arg3[%c0_3, %c0_4] : memref<1x128xf32, #tpu.memory_space<vmem>>, vector<1x128xf32>
    %4 = vector.broadcast %3 : vector<1x128xf32> to vector<256x128xf32>
    %5 = arith.addf %2, %4 : vector<256x128xf32>
    %cst_5 = arith.constant 0.000000e+00 : f32
    %6 = vector.broadcast %cst_5 : f32 to vector<256x128xf32>
    %7 = arith.maximumf %5, %6 : vector<256x128xf32>
    %8 = arith.truncf %7 : vector<256x128xf32> to vector<256x128xbf16>
    %c0_6 = arith.constant 0 : index
    %c0_7 = arith.constant 0 : index
    %9 = vector.load %arg4[%c0_6, %c0_7] : memref<256x128xbf16, #tpu.memory_space<vmem>>, vector<256x128xbf16>
    tpu.vector_store %arg4[%c0_6, %c0_7], %8 {strides = array<i32>} : memref<256x128xbf16, #tpu.memory_space<vmem>>, vector<256x128xbf16>,
    return
  }
  func.func @transform_0(%arg0: i32) -> (i32, i32) {
    %c0_i32 = arith.constant 0 : i32
    %c0_i32_0 = arith.constant 0 : i32
    return %arg0, %c0_i32 : i32, i32
  }
  func.func @transform_1(%arg0: i32) -> (i32, i32) {
    %c0_i32 = arith.constant 0 : i32
    %c0_i32_0 = arith.constant 0 : i32
    %c0_i32_1 = arith.constant 0 : i32
    return %c0_i32, %c0_i32_0 : i32, i32
  }
  func.func @transform_2(%arg0: i32) -> (i32, i32) {
    %c0_i32 = arith.constant 0 : i32
    %c0_i32_0 = arith.constant 0 : i32
    %c0_i32_1 = arith.constant 0 : i32
    return %c0_i32, %c0_i32_0 : i32, i32
  }
  func.func @transform_3(%arg0: i32) -> (i32, i32) {
    %c0_i32 = arith.constant 0 : i32
    %c0_i32_0 = arith.constant 0 : i32
    return %arg0, %c0_i32 : i32, i32
  }
}

module attributes {stable_mosaic.version = 11 : i64} {
  func.func @_mm_kernel(%arg0: i32, %arg1: memref<64x128xbf16, #tpu.memory_space<vmem>>, %arg2: memref<128x128xbf16, #tpu.memory_space<vmem>>, %arg3: memref<1x128xf32, #tpu.memory_space<vmem>>, %arg4: memref<64x128xbf16, #tpu.memory_space<vmem>>) attributes {dimension_semantics = [#tpu.dimension_semantics<parallel>], iteration_bounds = array<i64: 2>, scalar_prefetch = 0 : i64, scratch_operands = 0 : i64, tpu.core_type = #tpu.core_type<tc>, window_params = [{transform_indices = @transform_0, window_bounds = array<i64: 64, 128>}, {pipeline_mode = #tpu.pipeline_mode<synchronous>, transform_indices = @transform_1, window_bounds = array<i64: 128, 128>}, {pipeline_mode = #tpu.pipeline_mode<synchronous>, transform_indices = @transform_2, window_bounds = array<i64: 1, 128>}, {transform_indices = @transform_3, window_bounds = array<i64: 64, 128>}]} {
    %c0 = arith.constant 0 : index
    %c0_0 = arith.constant 0 : index
    %0 = vector.load %arg1[%c0, %c0_0] : memref<64x128xbf16, #tpu.memory_space<vmem>>, vector<64x128xbf16>
    %c0_1 = arith.constant 0 : index
    %c0_2 = arith.constant 0 : index
    %1 = vector.load %arg2[%c0_1, %c0_2] : memref<128x128xbf16, #tpu.memory_space<vmem>>, vector<128x128xbf16>
    %cst = arith.constant dense<0.000000e+00> : vector<64x128xf32>
    %2 = tpu.matmul %0, %1, %cst {dimension_numbers = #tpu.dot_dimension_numbers<[1], [0], [0], [1], [0, 0, 1, 1], [], []>} : vector<64x128xbf16>, vector<128x128xbf16>, vector<64x128xf32> -> vector<64x128xf32>
    %c0_3 = arith.constant 0 : index
    %c0_4 = arith.constant 0 : index
    %3 = vector.load %arg3[%c0_3, %c0_4] : memref<1x128xf32, #tpu.memory_space<vmem>>, vector<1x128xf32>
    %4 = vector.broadcast %3 : vector<1x128xf32> to vector<64x128xf32>
    %5 = arith.addf %2, %4 : vector<64x128xf32>
    %cst_5 = arith.constant 0.000000e+00 : f32
    %6 = vector.broadcast %cst_5 : f32 to vector<64x128xf32>
    %7 = arith.maximumf %5, %6 : vector<64x128xf32>
    %8 = arith.truncf %7 : vector<64x128xf32> to vector<64x128xbf16>
    %c0_6 = arith.constant 0 : index
    %c0_7 = arith.constant 0 : index
    %9 = vector.load %arg4[%c0_6, %c0_7] : memref<64x128xbf16, #tpu.memory_space<vmem>>, vector<64x128xbf16>
    tpu.vector_store %arg4[%c0_6, %c0_7], %8 {strides = array<i32>} : memref<64x128xbf16, #tpu.memory_space<vmem>>, vector<64x128xbf16>,
    return
  }
  func.func @transform_0(%arg0: i32) -> (i32, i32) {
    %c0_i32 = arith.constant 0 : i32
    %c0_i32_0 = arith.constant 0 : i32
    return %arg0, %c0_i32 : i32, i32
  }
  func.func @transform_1(%arg0: i32) -> (i32, i32) {
    %c0_i32 = arith.constant 0 : i32
    %c0_i32_0 = arith.constant 0 : i32
    %c0_i32_1 = arith.constant 0 : i32
    return %c0_i32, %c0_i32_0 : i32, i32
  }
  func.func @transform_2(%arg0: i32) -> (i32, i32) {
    %c0_i32 = arith.constant 0 : i32
    %c0_i32_0 = arith.constant 0 : i32
    %c0_i32_1 = arith.constant 0 : i32
    return %c0_i32, %c0_i32_0 : i32, i32
  }
  func.func @transform_3(%arg0: i32) -> (i32, i32) {
    %c0_i32 = arith.constant 0 : i32
    %c0_i32_0 = arith.constant 0 : i32
    return %arg0, %c0_i32 : i32, i32
  }
}

module attributes {stable_mosaic.version = 11 : i64} {
  func.func @_mm_kernel(%arg0: i32, %arg1: memref<64x1152xbf16, #tpu.memory_space<vmem>>, %arg2: memref<1152x128xbf16, #tpu.memory_space<vmem>>, %arg3: memref<1x128xf32, #tpu.memory_space<vmem>>, %arg4: memref<64x128xbf16, #tpu.memory_space<vmem>>) attributes {dimension_semantics = [#tpu.dimension_semantics<parallel>], iteration_bounds = array<i64: 2>, scalar_prefetch = 0 : i64, scratch_operands = 0 : i64, tpu.core_type = #tpu.core_type<tc>, window_params = [{transform_indices = @transform_0, window_bounds = array<i64: 64, 1152>}, {pipeline_mode = #tpu.pipeline_mode<synchronous>, transform_indices = @transform_1, window_bounds = array<i64: 1152, 128>}, {pipeline_mode = #tpu.pipeline_mode<synchronous>, transform_indices = @transform_2, window_bounds = array<i64: 1, 128>}, {transform_indices = @transform_3, window_bounds = array<i64: 64, 128>}]} {
    %c0 = arith.constant 0 : index
    %c0_0 = arith.constant 0 : index
    %0 = vector.load %arg1[%c0, %c0_0] : memref<64x1152xbf16, #tpu.memory_space<vmem>>, vector<64x1152xbf16>
    %c0_1 = arith.constant 0 : index
    %c0_2 = arith.constant 0 : index
    %1 = vector.load %arg2[%c0_1, %c0_2] : memref<1152x128xbf16, #tpu.memory_space<vmem>>, vector<1152x128xbf16>
    %cst = arith.constant dense<0.000000e+00> : vector<64x128xf32>
    %2 = tpu.matmul %0, %1, %cst {dimension_numbers = #tpu.dot_dimension_numbers<[1], [0], [0], [1], [0, 0, 1, 1], [], []>} : vector<64x1152xbf16>, vector<1152x128xbf16>, vector<64x128xf32> -> vector<64x128xf32>
    %c0_3 = arith.constant 0 : index
    %c0_4 = arith.constant 0 : index
    %3 = vector.load %arg3[%c0_3, %c0_4] : memref<1x128xf32, #tpu.memory_space<vmem>>, vector<1x128xf32>
    %4 = vector.broadcast %3 : vector<1x128xf32> to vector<64x128xf32>
    %5 = arith.addf %2, %4 : vector<64x128xf32>
    %cst_5 = arith.constant 0.000000e+00 : f32
    %6 = vector.broadcast %cst_5 : f32 to vector<64x128xf32>
    %7 = arith.maximumf %5, %6 : vector<64x128xf32>
    %8 = arith.truncf %7 : vector<64x128xf32> to vector<64x128xbf16>
    %c0_6 = arith.constant 0 : index
    %c0_7 = arith.constant 0 : index
    %9 = vector.load %arg4[%c0_6, %c0_7] : memref<64x128xbf16, #tpu.memory_space<vmem>>, vector<64x128xbf16>
    tpu.vector_store %arg4[%c0_6, %c0_7], %8 {strides = array<i32>} : memref<64x128xbf16, #tpu.memory_space<vmem>>, vector<64x128xbf16>,
    return
  }
  func.func @transform_0(%arg0: i32) -> (i32, i32) {
    %c0_i32 = arith.constant 0 : i32
    %c0_i32_0 = arith.constant 0 : i32
    return %arg0, %c0_i32 : i32, i32
  }
  func.func @transform_1(%arg0: i32) -> (i32, i32) {
    %c0_i32 = arith.constant 0 : i32
    %c0_i32_0 = arith.constant 0 : i32
    %c0_i32_1 = arith.constant 0 : i32
    return %c0_i32, %c0_i32_0 : i32, i32
  }
  func.func @transform_2(%arg0: i32) -> (i32, i32) {
    %c0_i32 = arith.constant 0 : i32
    %c0_i32_0 = arith.constant 0 : i32
    %c0_i32_1 = arith.constant 0 : i32
    return %c0_i32, %c0_i32_0 : i32, i32
  }
  func.func @transform_3(%arg0: i32) -> (i32, i32) {
    %c0_i32 = arith.constant 0 : i32
    %c0_i32_0 = arith.constant 0 : i32
    return %arg0, %c0_i32 : i32, i32
  }
}

module attributes {stable_mosaic.version = 11 : i64} {
  func.func @_mm_kernel(%arg0: i32, %arg1: memref<64x128xbf16, #tpu.memory_space<vmem>>, %arg2: memref<128x256xbf16, #tpu.memory_space<vmem>>, %arg3: memref<1x256xf32, #tpu.memory_space<vmem>>, %arg4: memref<64x256xbf16, #tpu.memory_space<vmem>>) attributes {dimension_semantics = [#tpu.dimension_semantics<parallel>], iteration_bounds = array<i64: 2>, scalar_prefetch = 0 : i64, scratch_operands = 0 : i64, tpu.core_type = #tpu.core_type<tc>, window_params = [{transform_indices = @transform_0, window_bounds = array<i64: 64, 128>}, {pipeline_mode = #tpu.pipeline_mode<synchronous>, transform_indices = @transform_1, window_bounds = array<i64: 128, 256>}, {pipeline_mode = #tpu.pipeline_mode<synchronous>, transform_indices = @transform_2, window_bounds = array<i64: 1, 256>}, {transform_indices = @transform_3, window_bounds = array<i64: 64, 256>}]} {
    %c0 = arith.constant 0 : index
    %c0_0 = arith.constant 0 : index
    %0 = vector.load %arg1[%c0, %c0_0] : memref<64x128xbf16, #tpu.memory_space<vmem>>, vector<64x128xbf16>
    %c0_1 = arith.constant 0 : index
    %c0_2 = arith.constant 0 : index
    %1 = vector.load %arg2[%c0_1, %c0_2] : memref<128x256xbf16, #tpu.memory_space<vmem>>, vector<128x256xbf16>
    %cst = arith.constant dense<0.000000e+00> : vector<64x256xf32>
    %2 = tpu.matmul %0, %1, %cst {dimension_numbers = #tpu.dot_dimension_numbers<[1], [0], [0], [1], [0, 0, 1, 1], [], []>} : vector<64x128xbf16>, vector<128x256xbf16>, vector<64x256xf32> -> vector<64x256xf32>
    %c0_3 = arith.constant 0 : index
    %c0_4 = arith.constant 0 : index
    %3 = vector.load %arg3[%c0_3, %c0_4] : memref<1x256xf32, #tpu.memory_space<vmem>>, vector<1x256xf32>
    %4 = vector.broadcast %3 : vector<1x256xf32> to vector<64x256xf32>
    %5 = arith.addf %2, %4 : vector<64x256xf32>
    %6 = arith.truncf %5 : vector<64x256xf32> to vector<64x256xbf16>
    %c0_5 = arith.constant 0 : index
    %c0_6 = arith.constant 0 : index
    %7 = vector.load %arg4[%c0_5, %c0_6] : memref<64x256xbf16, #tpu.memory_space<vmem>>, vector<64x256xbf16>
    tpu.vector_store %arg4[%c0_5, %c0_6], %6 {strides = array<i32>} : memref<64x256xbf16, #tpu.memory_space<vmem>>, vector<64x256xbf16>,
    return
  }
  func.func @transform_0(%arg0: i32) -> (i32, i32) {
    %c0_i32 = arith.constant 0 : i32
    %c0_i32_0 = arith.constant 0 : i32
    return %arg0, %c0_i32 : i32, i32
  }
  func.func @transform_1(%arg0: i32) -> (i32, i32) {
    %c0_i32 = arith.constant 0 : i32
    %c0_i32_0 = arith.constant 0 : i32
    %c0_i32_1 = arith.constant 0 : i32
    return %c0_i32, %c0_i32_0 : i32, i32
  }
  func.func @transform_2(%arg0: i32) -> (i32, i32) {
    %c0_i32 = arith.constant 0 : i32
    %c0_i32_0 = arith.constant 0 : i32
    %c0_i32_1 = arith.constant 0 : i32
    return %c0_i32, %c0_i32_0 : i32, i32
  }
  func.func @transform_3(%arg0: i32) -> (i32, i32) {
    %c0_i32 = arith.constant 0 : i32
    %c0_i32_0 = arith.constant 0 : i32
    return %arg0, %c0_i32 : i32, i32
  }
}

module attributes {stable_mosaic.version = 11 : i64} {
  func.func @_mm_kernel(%arg0: i32, %arg1: memref<64x128xbf16, #tpu.memory_space<vmem>>, %arg2: memref<128x256xbf16, #tpu.memory_space<vmem>>, %arg3: memref<1x256xf32, #tpu.memory_space<vmem>>, %arg4: memref<64x256xbf16, #tpu.memory_space<vmem>>, %arg5: memref<64x256xbf16, #tpu.memory_space<vmem>>) attributes {dimension_semantics = [#tpu.dimension_semantics<parallel>], iteration_bounds = array<i64: 2>, scalar_prefetch = 0 : i64, scratch_operands = 0 : i64, tpu.core_type = #tpu.core_type<tc>, window_params = [{transform_indices = @transform_0, window_bounds = array<i64: 64, 128>}, {pipeline_mode = #tpu.pipeline_mode<synchronous>, transform_indices = @transform_1, window_bounds = array<i64: 128, 256>}, {pipeline_mode = #tpu.pipeline_mode<synchronous>, transform_indices = @transform_2, window_bounds = array<i64: 1, 256>}, {transform_indices = @transform_3, window_bounds = array<i64: 64, 256>}, {transform_indices = @transform_4, window_bounds = array<i64: 64, 256>}]} {
    %c0 = arith.constant 0 : index
    %c0_0 = arith.constant 0 : index
    %0 = vector.load %arg1[%c0, %c0_0] : memref<64x128xbf16, #tpu.memory_space<vmem>>, vector<64x128xbf16>
    %c0_1 = arith.constant 0 : index
    %c0_2 = arith.constant 0 : index
    %1 = vector.load %arg2[%c0_1, %c0_2] : memref<128x256xbf16, #tpu.memory_space<vmem>>, vector<128x256xbf16>
    %cst = arith.constant dense<0.000000e+00> : vector<64x256xf32>
    %2 = tpu.matmul %0, %1, %cst {dimension_numbers = #tpu.dot_dimension_numbers<[1], [0], [0], [1], [0, 0, 1, 1], [], []>} : vector<64x128xbf16>, vector<128x256xbf16>, vector<64x256xf32> -> vector<64x256xf32>
    %c0_3 = arith.constant 0 : index
    %c0_4 = arith.constant 0 : index
    %3 = vector.load %arg3[%c0_3, %c0_4] : memref<1x256xf32, #tpu.memory_space<vmem>>, vector<1x256xf32>
    %4 = vector.broadcast %3 : vector<1x256xf32> to vector<64x256xf32>
    %5 = arith.addf %2, %4 : vector<64x256xf32>
    %c0_5 = arith.constant 0 : index
    %c0_6 = arith.constant 0 : index
    %6 = vector.load %arg4[%c0_5, %c0_6] : memref<64x256xbf16, #tpu.memory_space<vmem>>, vector<64x256xbf16>
    %7 = arith.extf %6 : vector<64x256xbf16> to vector<64x256xf32>
    %8 = arith.addf %5, %7 : vector<64x256xf32>
    %cst_7 = arith.constant 0.000000e+00 : f32
    %9 = vector.broadcast %cst_7 : f32 to vector<64x256xf32>
    %10 = arith.maximumf %8, %9 : vector<64x256xf32>
    %11 = arith.truncf %10 : vector<64x256xf32> to vector<64x256xbf16>
    %c0_8 = arith.constant 0 : index
    %c0_9 = arith.constant 0 : index
    %12 = vector.load %arg5[%c0_8, %c0_9] : memref<64x256xbf16, #tpu.memory_space<vmem>>, vector<64x256xbf16>
    tpu.vector_store %arg5[%c0_8, %c0_9], %11 {strides = array<i32>} : memref<64x256xbf16, #tpu.memory_space<vmem>>, vector<64x256xbf16>,
    return
  }
  func.func @transform_0(%arg0: i32) -> (i32, i32) {
    %c0_i32 = arith.constant 0 : i32
    %c0_i32_0 = arith.constant 0 : i32
    return %arg0, %c0_i32 : i32, i32
  }
  func.func @transform_1(%arg0: i32) -> (i32, i32) {
    %c0_i32 = arith.constant 0 : i32
    %c0_i32_0 = arith.constant 0 : i32
    %c0_i32_1 = arith.constant 0 : i32
    return %c0_i32, %c0_i32_0 : i32, i32
  }
  func.func @transform_2(%arg0: i32) -> (i32, i32) {
    %c0_i32 = arith.constant 0 : i32
    %c0_i32_0 = arith.constant 0 : i32
    %c0_i32_1 = arith.constant 0 : i32
    return %c0_i32, %c0_i32_0 : i32, i32
  }
  func.func @transform_3(%arg0: i32) -> (i32, i32) {
    %c0_i32 = arith.constant 0 : i32
    %c0_i32_0 = arith.constant 0 : i32
    return %arg0, %c0_i32 : i32, i32
  }
  func.func @transform_4(%arg0: i32) -> (i32, i32) {
    %c0_i32 = arith.constant 0 : i32
    %c0_i32_0 = arith.constant 0 : i32
    return %arg0, %c0_i32 : i32, i32
  }
}

module attributes {stable_mosaic.version = 11 : i64} {
  func.func @_mm_kernel(%arg0: i32, %arg1: memref<64x256xbf16, #tpu.memory_space<vmem>>, %arg2: memref<256x128xbf16, #tpu.memory_space<vmem>>, %arg3: memref<1x128xf32, #tpu.memory_space<vmem>>, %arg4: memref<64x128xbf16, #tpu.memory_space<vmem>>) attributes {dimension_semantics = [#tpu.dimension_semantics<parallel>], iteration_bounds = array<i64: 2>, scalar_prefetch = 0 : i64, scratch_operands = 0 : i64, tpu.core_type = #tpu.core_type<tc>, window_params = [{transform_indices = @transform_0, window_bounds = array<i64: 64, 256>}, {pipeline_mode = #tpu.pipeline_mode<synchronous>, transform_indices = @transform_1, window_bounds = array<i64: 256, 128>}, {pipeline_mode = #tpu.pipeline_mode<synchronous>, transform_indices = @transform_2, window_bounds = array<i64: 1, 128>}, {transform_indices = @transform_3, window_bounds = array<i64: 64, 128>}]} {
    %c0 = arith.constant 0 : index
    %c0_0 = arith.constant 0 : index
    %0 = vector.load %arg1[%c0, %c0_0] : memref<64x256xbf16, #tpu.memory_space<vmem>>, vector<64x256xbf16>
    %c0_1 = arith.constant 0 : index
    %c0_2 = arith.constant 0 : index
    %1 = vector.load %arg2[%c0_1, %c0_2] : memref<256x128xbf16, #tpu.memory_space<vmem>>, vector<256x128xbf16>
    %cst = arith.constant dense<0.000000e+00> : vector<64x128xf32>
    %2 = tpu.matmul %0, %1, %cst {dimension_numbers = #tpu.dot_dimension_numbers<[1], [0], [0], [1], [0, 0, 1, 1], [], []>} : vector<64x256xbf16>, vector<256x128xbf16>, vector<64x128xf32> -> vector<64x128xf32>
    %c0_3 = arith.constant 0 : index
    %c0_4 = arith.constant 0 : index
    %3 = vector.load %arg3[%c0_3, %c0_4] : memref<1x128xf32, #tpu.memory_space<vmem>>, vector<1x128xf32>
    %4 = vector.broadcast %3 : vector<1x128xf32> to vector<64x128xf32>
    %5 = arith.addf %2, %4 : vector<64x128xf32>
    %cst_5 = arith.constant 0.000000e+00 : f32
    %6 = vector.broadcast %cst_5 : f32 to vector<64x128xf32>
    %7 = arith.maximumf %5, %6 : vector<64x128xf32>
    %8 = arith.truncf %7 : vector<64x128xf32> to vector<64x128xbf16>
    %c0_6 = arith.constant 0 : index
    %c0_7 = arith.constant 0 : index
    %9 = vector.load %arg4[%c0_6, %c0_7] : memref<64x128xbf16, #tpu.memory_space<vmem>>, vector<64x128xbf16>
    tpu.vector_store %arg4[%c0_6, %c0_7], %8 {strides = array<i32>} : memref<64x128xbf16, #tpu.memory_space<vmem>>, vector<64x128xbf16>,
    return
  }
  func.func @transform_0(%arg0: i32) -> (i32, i32) {
    %c0_i32 = arith.constant 0 : i32
    %c0_i32_0 = arith.constant 0 : i32
    return %arg0, %c0_i32 : i32, i32
  }
  func.func @transform_1(%arg0: i32) -> (i32, i32) {
    %c0_i32 = arith.constant 0 : i32
    %c0_i32_0 = arith.constant 0 : i32
    %c0_i32_1 = arith.constant 0 : i32
    return %c0_i32, %c0_i32_0 : i32, i32
  }
  func.func @transform_2(%arg0: i32) -> (i32, i32) {
    %c0_i32 = arith.constant 0 : i32
    %c0_i32_0 = arith.constant 0 : i32
    %c0_i32_1 = arith.constant 0 : i32
    return %c0_i32, %c0_i32_0 : i32, i32
  }
  func.func @transform_3(%arg0: i32) -> (i32, i32) {
    %c0_i32 = arith.constant 0 : i32
    %c0_i32_0 = arith.constant 0 : i32
    return %arg0, %c0_i32 : i32, i32
  }
}

</mosaic_0001>

<bundles_post_ra>
// kernel: _lambda_.12
= control target key start
LH: loop header
LB: loop body
LE: loop exit
PB: predicated region body
PF: predicated region fallthrough
CT: control target
= control target key end

     0   :  { %s1363_s12 = smov 0   ;;  %s1521_s0 = inlined_call_operand.vmem [shape: bf16[512,256], index: 0, kind: input, shape index: {}]   ;;  %s1522_s1 = inlined_call_operand.vmem [shape: bf16[256,128], index: 1, kind: input, shape index: {}]   ;;  %s1523_s2 = inlined_call_operand.vmem [shape: f32[1,128], index: 2, kind: input, shape index: {}]   ;;  %s1524_s3 = inlined_call_operand.vmem [shape: bf16[512,128], index: 3, kind: output, shape index: {}]  }
   0x1 LB: > { %s914_s13 = sadd.s32 4294967295, %s1341_s12   ;;  %p918_p0 = scmp.ge.s32.totalorder %s1341_s12, 1  ;;  %s1341_s12 = sphi %s1363_s12, %s13_s12  }
   0x2   : > { %p139_p1 = scmp.lt.s32.totalorder %s1341_s12, 3 }
   0x4   : > { %p140_p2 = pnand %p918_p0, %p139_p1 }
   0x5   : > { %v1271_v0 = vld [vmem:[%s1522_s1 + $0x40] sm:$0xff] (!%p140_p2)   ;;  %s919_s16 = sshll.u32 (!%p140_p2), %s914_s13, 5  ;;  %v1273_v2 = vld [vmem:[%s1522_s1 + $0x48] sm:$0xff] (!%p140_p2)   ;;  %v1275_v4 = vld [vmem:[%s1522_s1 + $0x50] sm:$0xff] (!%p140_p2)  }
   0x6   : > { %143 = sbr.rel (%p140_p2) target bundleno = 319 (0x13f), region = 32  ;;  %v1272_v1 = vld [vmem:[%s1522_s1] sm:$0xff] (!%p140_p2)   ;;  %1135 = vmatprep.subr.bf16.mxu0 (!%p140_p2), %v1271_v0  ;;  %1247 = vmatprep.subr.bf16.mxu1 (!%p140_p2), %v1271_v0  ;;  %v1274_v3 = vld [vmem:[%s1522_s1 + $0x8] sm:$0xff] (!%p140_p2)   ;;  %p165_p3 = scmp.lt.s32.totalorder (!%p140_p2), %s919_s16, 63  ;;  %v1276_v5 = vld [vmem:[%s1522_s1 + $0x10] sm:$0xff] (!%p140_p2)  }
   0x7   : > { %1136 = vmatpush3.bf16.msra.mxu0 (!%p140_p2), %v1272_v1  ;;  %1255 = vmatpush3.bf16.msra.mxu1 (!%p140_p2), %v1272_v1  ;;  %v1277_v6 = vld [vmem:[%s1522_s1 + $0x58] sm:$0xff] (!%p140_p2)   ;;  %v1279_v8 = vld [vmem:[%s1522_s1 + $0x60] sm:$0xff] (!%p140_p2)   ;;  %v1281_v10 = vld [vmem:[%s1522_s1 + $0x68] sm:$0xff] (!%p140_p2)  }
   0x8   : > { %1137 = vmatprep.subr.bf16.mxu0 (!%p140_p2), %v1273_v2  ;;  %1248 = vmatprep.subr.bf16.mxu1 (!%p140_p2), %v1273_v2  ;;  %v1278_v7 = vld [vmem:[%s1522_s1 + $0x18] sm:$0xff] (!%p140_p2)   ;;  %v1280_v9 = vld [vmem:[%s1522_s1 + $0x20] sm:$0xff] (!%p140_p2)   ;;  %v1282_v13 = vld [vmem:[%s1522_s1 + $0x28] sm:$0xff] (!%p140_p2)  }
   0x9   : > { %v1283_v14 = vld [vmem:[%s1522_s1 + $0x70] sm:$0xff] (!%p140_p2)   ;;  %v1285_v16 = vld [vmem:[%s1522_s1 + $0x78] sm:$0xff] (!%p140_p2)   ;;  %v1462_v50 = vld [vmem:[%s1523_s2] ss:$0 sm:$0xff] (!%p140_p2) }
   0xa   : > { %v1284_v15 = vld [vmem:[%s1522_s1 + $0x30] sm:$0xff] (!%p140_p2)   ;;  %v1286_v17 = vld [vmem:[%s1522_s1 + $0x38] sm:$0xff] (!%p140_p2)  }
   0xb   : > { %1138 = vmatpush3.bf16.msra.mxu0 (!%p140_p2), %v1274_v3  ;;  %1256 = vmatpush3.bf16.msra.mxu1 (!%p140_p2), %v1274_v3 }
   0xc   : > { %1139 = vmatprep.subr.bf16.mxu0 (!%p140_p2), %v1275_v4  ;;  %1249 = vmatprep.subr.bf16.mxu1 (!%p140_p2), %v1275_v4 }
   0xd   : > { %s1526_s16 = smov (!%p165_p3, %s919_s16), 63 }
   0xe   : > { %s1007_s4 = sshll.u32 %s1526_s16, 3  ;;  %s923_s28 = sshll.u32 %s1526_s16, 2 }
   0xf   : > { %1140 = vmatpush3.bf16.msra.mxu0 %v1276_v5  ;;  %1257 = vmatpush3.bf16.msra.mxu1 %v1276_v5  ;;  %s1404_s9 = scalar_lea.vmem %s1521_s0, %s1007_s4  ;;  %s1472_s4 = scalar_lea.vmem %s1524_s3, %s923_s28 }
  0x10   : > { %1141 = vmatprep.subr.bf16.mxu0 %v1277_v6  ;;  %1250 = vmatprep.subr.bf16.mxu1 %v1277_v6  ;;  %v1289_v11 = vld [vmem:[%s1404_s9 + $0x4] ss:$8 sps:$4 sm:$0xff]   ;;  %v1287_v18 = vld [vmem:[%s1404_s9] ss:$8 sps:$4 sm:$0xff]   ;;  %v1293_v20 = vld [vmem:[%s1404_s9 + $0x14] ss:$8 sps:$4 sm:$0xff]  }
  0x11   : > { %v1292_v12 = vld [vmem:[%s1404_s9 + $0x84] ss:$8 sps:$4 sm:$0xff]   ;;  %537 = vmatprep.mubr.bf16.mxu0 %v1289_v11  ;;  %v1290_v19 = vld [vmem:[%s1404_s9 + $0x80] ss:$8 sps:$4 sm:$0xff]   ;;  %v1295_v21 = vld [vmem:[%s1404_s9 + $0x94] ss:$8 sps:$4 sm:$0xff]  }
  0x12   : > { %601 = vmatprep.mubr.bf16.mxu1 %v1292_v12  ;;  %v1297_v22 = vld [vmem:[%s1404_s9 + $0x10] ss:$8 sps:$4 sm:$0xff]   ;;  %v1299_v24 = vld [vmem:[%s1404_s9 + $0x24] ss:$8 sps:$4 sm:$0xff]   ;;  %v1303_v26 = vld [vmem:[%s1404_s9 + $0x20] ss:$8 sps:$4 sm:$0xff]  }
  0x13   : > { %1142 = vmatpush3.bf16.msra.mxu0 %v1278_v7  ;;  %1258 = vmatpush3.bf16.msra.mxu1 %v1278_v7  ;;  %v1298_v23 = vld [vmem:[%s1404_s9 + $0x90] ss:$8 sps:$4 sm:$0xff]   ;;  %v1301_v25 = vld [vmem:[%s1404_s9 + $0xa4] ss:$8 sps:$4 sm:$0xff]   ;;  %v1304_v27 = vld [vmem:[%s1404_s9 + $0xa0] ss:$8 sps:$4 sm:$0xff]  }
  0x14   : > { %1143 = vmatprep.subr.bf16.mxu0 %v1279_v8  ;;  %1251 = vmatprep.subr.bf16.mxu1 %v1279_v8  ;;  %v1305_v28 = vld [vmem:[%s1404_s9 + $0x34] ss:$8 sps:$4 sm:$0xff]   ;;  %v1309_v30 = vld [vmem:[%s1404_s9 + $0x30] ss:$8 sps:$4 sm:$0xff]   ;;  %v1311_v32 = vld [vmem:[%s1404_s9 + $0x44] ss:$8 sps:$4 sm:$0xff]  }
  0x15   : > { %v1307_v29 = vld [vmem:[%s1404_s9 + $0xb4] ss:$8 sps:$4 sm:$0xff]   ;;  %v1310_v31 = vld [vmem:[%s1404_s9 + $0xb0] ss:$8 sps:$4 sm:$0xff]   ;;  %v1313_v33 = vld [vmem:[%s1404_s9 + $0xc4] ss:$8 sps:$4 sm:$0xff]  }
  0x16   : > { %v1315_v34 = vld [vmem:[%s1404_s9 + $0x40] ss:$8 sps:$4 sm:$0xff]   ;;  %v1317_v36 = vld [vmem:[%s1404_s9 + $0x54] ss:$8 sps:$4 sm:$0xff]   ;;  %v1321_v38 = vld [vmem:[%s1404_s9 + $0x50] ss:$8 sps:$4 sm:$0xff]  }
  0x17   : > { %1144 = vmatpush3.bf16.msra.mxu0 %v1280_v9  ;;  %1259 = vmatpush3.bf16.msra.mxu1 %v1280_v9  ;;  %v1316_v35 = vld [vmem:[%s1404_s9 + $0xc0] ss:$8 sps:$4 sm:$0xff]   ;;  %v1319_v37 = vld [vmem:[%s1404_s9 + $0xd4] ss:$8 sps:$4 sm:$0xff]   ;;  %v1322_v39 = vld [vmem:[%s1404_s9 + $0xd0] ss:$8 sps:$4 sm:$0xff]  }
  0x18   : > { %1145 = vmatprep.subr.bf16.mxu0 %v1281_v10  ;;  %1252 = vmatprep.subr.bf16.mxu1 %v1281_v10  ;;  %v1323_v40 = vld [vmem:[%s1404_s9 + $0x64] ss:$8 sps:$4 sm:$0xff]   ;;  %v1327_v42 = vld [vmem:[%s1404_s9 + $0x60] ss:$8 sps:$4 sm:$0xff]   ;;  %v1329_v44 = vld [vmem:[%s1404_s9 + $0x74] ss:$8 sps:$4 sm:$0xff]  }
  0x19   : > { %v1325_v41 = vld [vmem:[%s1404_s9 + $0xe4] ss:$8 sps:$4 sm:$0xff]   ;;  %v1328_v43 = vld [vmem:[%s1404_s9 + $0xe0] ss:$8 sps:$4 sm:$0xff]   ;;  %v1331_v45 = vld [vmem:[%s1404_s9 + $0xf4] ss:$8 sps:$4 sm:$0xff]  }
  0x1a   : > { %v1333_v46 = vld [vmem:[%s1404_s9 + $0x70] ss:$8 sps:$4 sm:$0xff]  }
  0x1b   : > { %1146 = vmatpush3.bf16.msra.mxu0 %v1282_v13  ;;  %1260 = vmatpush3.bf16.msra.mxu1 %v1282_v13  ;;  %v1334_v47 = vld [vmem:[%s1404_s9 + $0xf0] ss:$8 sps:$4 sm:$0xff]  }
  0x1c   : > { %1147 = vmatprep.subr.bf16.mxu0 %v1283_v14  ;;  %1253 = vmatprep.subr.bf16.mxu1 %v1283_v14 }
  0x1f   : > { %1148 = vmatpush3.bf16.msra.mxu0 %v1284_v15  ;;  %1261 = vmatpush3.bf16.msra.mxu1 %v1284_v15 }
  0x20   : > { %1149 = vmatprep.subr.bf16.mxu0 %v1285_v16  ;;  %1254 = vmatprep.subr.bf16.mxu1 %v1285_v16 }
  0x23   : > { %1150 = vmatpush3.bf16.msra.mxu0 %v1286_v17  ;;  %1262 = vmatpush3.bf16.msra.mxu1 %v1286_v17 }
  0x26   : > { %538 = vmatmul.mubr.bf16.vlgmr.msra.gmra.mrb[0].mxu0 %v1287_v18  ;;  %602 = vmatmul.mubr.bf16.vlgmr.msra.gmra.mrb[0].mxu1 %v1290_v19 }
  0x27   : > { %545 = vmatprep.mubr.bf16.mxu0 %v1293_v20  ;;  %609 = vmatprep.mubr.bf16.mxu1 %v1295_v21 }
  0x2e   : > { %546 = vmatmul.mubr.bf16.gmra.mrb[4].mxu0 %v1297_v22  ;;  %610 = vmatmul.mubr.bf16.gmra.mrb[4].mxu1 %v1298_v23 }
  0x2f   : > { %553 = vmatprep.mubr.bf16.mxu0 %v1299_v24  ;;  %617 = vmatprep.mubr.bf16.mxu1 %v1301_v25 }
  0x36   : > { %554 = vmatmul.mubr.bf16.gmra.mrb[8].mxu0 %v1303_v26  ;;  %618 = vmatmul.mubr.bf16.gmra.mrb[8].mxu1 %v1304_v27 }
  0x37   : > { %561 = vmatprep.mubr.bf16.mxu0 %v1305_v28  ;;  %625 = vmatprep.mubr.bf16.mxu1 %v1307_v29 }
  0x3e   : > { %562 = vmatmul.mubr.bf16.gmra.mrb[12].mxu0 %v1309_v30  ;;  %626 = vmatmul.mubr.bf16.gmra.mrb[12].mxu1 %v1310_v31 }
  0x3f   : > { %569 = vmatprep.mubr.bf16.mxu0 %v1311_v32  ;;  %633 = vmatprep.mubr.bf16.mxu1 %v1313_v33 }
  0x46   : > { %570 = vmatmul.mubr.bf16.gmra.mrb[16].mxu0 %v1315_v34  ;;  %634 = vmatmul.mubr.bf16.gmra.mrb[16].mxu1 %v1316_v35 }
  0x47   : > { %577 = vmatprep.mubr.bf16.mxu0 %v1317_v36  ;;  %641 = vmatprep.mubr.bf16.mxu1 %v1319_v37 }
  0x4e   : > { %578 = vmatmul.mubr.bf16.gmra.mrb[20].mxu0 %v1321_v38  ;;  %642 = vmatmul.mubr.bf16.gmra.mrb[20].mxu1 %v1322_v39 }
  0x4f   : > { %585 = vmatprep.mubr.bf16.mxu0 %v1323_v40  ;;  %649 = vmatprep.mubr.bf16.mxu1 %v1325_v41 }
  0x56   : > { %586 = vmatmul.mubr.bf16.gmra.mrb[24].mxu0 %v1327_v42  ;;  %650 = vmatmul.mubr.bf16.gmra.mrb[24].mxu1 %v1328_v43 }
  0x57   : > { %593 = vmatprep.mubr.bf16.mxu0 %v1329_v44  ;;  %657 = vmatprep.mubr.bf16.mxu1 %v1331_v45 }
  0x5e   : > { %594 = vmatmul.mubr.bf16.gmra.mrb[28].mxu0 %v1333_v46  ;;  %658 = vmatmul.mubr.bf16.gmra.mrb[28].mxu1 %v1334_v47 }
  0xf9   : > { %v1151_v48 = vpop.f32.mrb[0].mxu0  ;;  %v1199_v49 = vpop.f32.mrb[0].mxu1 }
  0xfa   : > { %v1152_v51 = vpop.f32.mrb[1].mxu0  ;;  %v1200_v52 = vpop.f32.mrb[1].mxu1 }
  0xfb   : > { %v1153_v53 = vadd.f32 %v1152_v51, %v1151_v48  ;;  %v1201_v54 = vadd.f32 %v1200_v52, %v1199_v49  ;;  %v1154_v55 = vpop.f32.mrb[2].mxu0  ;;  %v1202_v56 = vpop.f32.mrb[2].mxu1 }
  0xfc   : > { %v1155_v57 = vpop.f32.mrb[3].mxu0  ;;  %v1203_v58 = vpop.f32.mrb[3].mxu1 }
  0xfd   : > { %v540_v59 = vadd.f32 %v1153_v53, %v1462_v50  ;;  %v604_v60 = vadd.f32 %v1201_v54, %v1462_v50  ;;  %v1156_v61 = vadd.f32 %v1155_v57, %v1154_v55  ;;  %v1204_v62 = vadd.f32 %v1203_v58, %v1202_v56 }
  0xff   : > { %v543_v63 = vadd.f32 %v1156_v61, %v1462_v50  ;;  %v607_v0 = vadd.f32 %v1204_v62, %v1462_v50  ;;  %v666_v1 = vmax.f32 %v540_v59, 0.0  ;;  %v682_v2 = vmax.f32 %v604_v60, 0.0 }
 0x101   : > { %v667_v3 = vmax.f32 %v543_v63, 0.0  ;;  %v683_v4 = vmax.f32 %v607_v0, 0.0  ;;  %v1157_v5 = vpop.f32.mrb[4].mxu0  ;;  %v1205_v6 = vpop.f32.mrb[4].mxu1 }
 0x102   : > { %v1158_v7 = vpop.f32.mrb[5].mxu0  ;;  %v1206_v8 = vpop.f32.mrb[5].mxu1 }
 0x103   : > { %v1043_v9 = vpack.c.bf16 %v667_v3, %v666_v1  ;;  %v1083_v10 = vpack.c.bf16 %v683_v4, %v682_v2  ;;  %v1159_v11 = vadd.f32 %v1158_v7, %v1157_v5  ;;  %v1207_v12 = vadd.f32 %v1206_v8, %v1205_v6  ;;  %v1160_v13 = vpop.f32.mrb[6].mxu0  ;;  %v1208_v14 = vpop.f32.mrb[6].mxu1 }
 0x104   : > { %v1161_v15 = vpop.f32.mrb[7].mxu0  ;;  %v1209_v16 = vpop.f32.mrb[7].mxu1 }
 0x105   : > { %1044 = vst [vmem:[%s1472_s4] sm:$0xff] %v1043_v9   ;;  %1127 = vst [vmem:[%s1472_s4 + $0x40] sm:$0xff] %v1083_v10   ;;  %v548_v17 = vadd.f32 %v1159_v11, %v1462_v50  ;;  %v612_v18 = vadd.f32 %v1207_v12, %v1462_v50  ;;  %v1162_v19 = vadd.f32 %v1161_v15, %v1160_v13 }
 0x106   : > { %v1210_v20 = vadd.f32 %v1209_v16, %v1208_v14 }
 0x107   : > { %v551_v21 = vadd.f32 %v1162_v19, %v1462_v50  ;;  %v668_v23 = vmax.f32 %v548_v17, 0.0  ;;  %v684_v24 = vmax.f32 %v612_v18, 0.0 }
 0x108   : > { %v615_v22 = vadd.f32 %v1210_v20, %v1462_v50 }
 0x109   : > { %v669_v25 = vmax.f32 %v551_v21, 0.0  ;;  %v1163_v27 = vpop.f32.mrb[8].mxu0  ;;  %v1211_v28 = vpop.f32.mrb[8].mxu1 }
 0x10a   : > { %v685_v26 = vmax.f32 %v615_v22, 0.0  ;;  %v1164_v29 = vpop.f32.mrb[9].mxu0  ;;  %v1212_v30 = vpop.f32.mrb[9].mxu1 }
 0x10b   : > { %v1048_v31 = vpack.c.bf16 %v669_v25, %v668_v23  ;;  %v1165_v33 = vadd.f32 %v1164_v29, %v1163_v27  ;;  %v1213_v34 = vadd.f32 %v1212_v30, %v1211_v28  ;;  %v1166_v35 = vpop.f32.mrb[10].mxu0  ;;  %v1214_v36 = vpop.f32.mrb[10].mxu1 }
 0x10c   : > { %v1088_v32 = vpack.c.bf16 %v685_v26, %v684_v24  ;;  %v1167_v37 = vpop.f32.mrb[11].mxu0  ;;  %v1215_v38 = vpop.f32.mrb[11].mxu1 }
 0x10d   : > { %1120 = vst [vmem:[%s1472_s4 + $0x8] sm:$0xff] %v1048_v31   ;;  %v556_v39 = vadd.f32 %v1165_v33, %v1462_v50  ;;  %v620_v40 = vadd.f32 %v1213_v34, %v1462_v50  ;;  %v1168_v41 = vadd.f32 %v1167_v37, %v1166_v35  ;;  %v1216_v42 = vadd.f32 %v1215_v38, %v1214_v36 }
 0x10e   : > { %1128 = vst [vmem:[%s1472_s4 + $0x48] sm:$0xff] %v1088_v32  }
 0x10f   : > { %v559_v43 = vadd.f32 %v1168_v41, %v1462_v50  ;;  %v623_v44 = vadd.f32 %v1216_v42, %v1462_v50  ;;  %v670_v45 = vmax.f32 %v556_v39, 0.0  ;;  %v686_v46 = vmax.f32 %v620_v40, 0.0 }
 0x111   : > { %v671_v47 = vmax.f32 %v559_v43, 0.0  ;;  %v687_v48 = vmax.f32 %v623_v44, 0.0  ;;  %v1169_v49 = vpop.f32.mrb[12].mxu0  ;;  %v1217_v51 = vpop.f32.mrb[12].mxu1 }
 0x112   : > { %v1170_v52 = vpop.f32.mrb[13].mxu0  ;;  %v1218_v53 = vpop.f32.mrb[13].mxu1 }
 0x113   : > { %v1053_v54 = vpack.c.bf16 %v671_v47, %v670_v45  ;;  %v1093_v55 = vpack.c.bf16 %v687_v48, %v686_v46  ;;  %v1171_v56 = vadd.f32 %v1170_v52, %v1169_v49  ;;  %v1219_v57 = vadd.f32 %v1218_v53, %v1217_v51  ;;  %v1172_v58 = vpop.f32.mrb[14].mxu0  ;;  %v1220_v59 = vpop.f32.mrb[14].mxu1 }
 0x114   : > { %v1173_v60 = vpop.f32.mrb[15].mxu0  ;;  %v1221_v61 = vpop.f32.mrb[15].mxu1 }
 0x115   : > { %1121 = vst [vmem:[%s1472_s4 + $0x10] sm:$0xff] %v1053_v54   ;;  %1129 = vst [vmem:[%s1472_s4 + $0x50] sm:$0xff] %v1093_v55   ;;  %v564_v62 = vadd.f32 %v1171_v56, %v1462_v50  ;;  %v628_v63 = vadd.f32 %v1219_v57, %v1462_v50  ;;  %v1174_v0 = vadd.f32 %v1173_v60, %v1172_v58 }
 0x116   : > { %v1222_v1 = vadd.f32 %v1221_v61, %v1220_v59 }
 0x117   : > { %v567_v2 = vadd.f32 %v1174_v0, %v1462_v50  ;;  %v672_v4 = vmax.f32 %v564_v62, 0.0  ;;  %v688_v5 = vmax.f32 %v628_v63, 0.0 }
 0x118   : > { %v631_v3 = vadd.f32 %v1222_v1, %v1462_v50 }
 0x119   : > { %v673_v6 = vmax.f32 %v567_v2, 0.0  ;;  %v1175_v8 = vpop.f32.mrb[16].mxu0  ;;  %v1223_v9 = vpop.f32.mrb[16].mxu1 }
 0x11a   : > { %v689_v7 = vmax.f32 %v631_v3, 0.0  ;;  %v1176_v10 = vpop.f32.mrb[17].mxu0  ;;  %v1224_v11 = vpop.f32.mrb[17].mxu1 }
 0x11b   : > { %v1058_v12 = vpack.c.bf16 %v673_v6, %v672_v4  ;;  %v1177_v14 = vadd.f32 %v1176_v10, %v1175_v8  ;;  %v1225_v15 = vadd.f32 %v1224_v11, %v1223_v9  ;;  %v1178_v16 = vpop.f32.mrb[18].mxu0  ;;  %v1226_v17 = vpop.f32.mrb[18].mxu1 }
 0x11c   : > { %v1098_v13 = vpack.c.bf16 %v689_v7, %v688_v5  ;;  %v1179_v18 = vpop.f32.mrb[19].mxu0  ;;  %v1227_v19 = vpop.f32.mrb[19].mxu1 }
 0x11d   : > { %1122 = vst [vmem:[%s1472_s4 + $0x18] sm:$0xff] %v1058_v12   ;;  %v572_v20 = vadd.f32 %v1177_v14, %v1462_v50  ;;  %v636_v21 = vadd.f32 %v1225_v15, %v1462_v50  ;;  %v1180_v22 = vadd.f32 %v1179_v18, %v1178_v16  ;;  %v1228_v23 = vadd.f32 %v1227_v19, %v1226_v17 }
 0x11e   : > { %1130 = vst [vmem:[%s1472_s4 + $0x58] sm:$0xff] %v1098_v13  }
 0x11f   : > { %v575_v24 = vadd.f32 %v1180_v22, %v1462_v50  ;;  %v639_v25 = vadd.f32 %v1228_v23, %v1462_v50  ;;  %v674_v26 = vmax.f32 %v572_v20, 0.0  ;;  %v690_v27 = vmax.f32 %v636_v21, 0.0 }
 0x121   : > { %v675_v28 = vmax.f32 %v575_v24, 0.0  ;;  %v691_v29 = vmax.f32 %v639_v25, 0.0  ;;  %v1181_v30 = vpop.f32.mrb[20].mxu0  ;;  %v1229_v31 = vpop.f32.mrb[20].mxu1 }
 0x122   : > { %v1182_v32 = vpop.f32.mrb[21].mxu0  ;;  %v1230_v33 = vpop.f32.mrb[21].mxu1 }
 0x123   : > { %v1063_v34 = vpack.c.bf16 %v675_v28, %v674_v26  ;;  %v1103_v35 = vpack.c.bf16 %v691_v29, %v690_v27  ;;  %v1183_v36 = vadd.f32 %v1182_v32, %v1181_v30  ;;  %v1231_v37 = vadd.f32 %v1230_v33, %v1229_v31  ;;  %v1184_v38 = vpop.f32.mrb[22].mxu0  ;;  %v1232_v39 = vpop.f32.mrb[22].mxu1 }
 0x124   : > { %v1185_v40 = vpop.f32.mrb[23].mxu0  ;;  %v1233_v41 = vpop.f32.mrb[23].mxu1 }
 0x125   : > { %1123 = vst [vmem:[%s1472_s4 + $0x20] sm:$0xff] %v1063_v34   ;;  %1131 = vst [vmem:[%s1472_s4 + $0x60] sm:$0xff] %v1103_v35   ;;  %v580_v42 = vadd.f32 %v1183_v36, %v1462_v50  ;;  %v644_v43 = vadd.f32 %v1231_v37, %v1462_v50  ;;  %v1186_v44 = vadd.f32 %v1185_v40, %v1184_v38 }
 0x126   : > { %v1234_v45 = vadd.f32 %v1233_v41, %v1232_v39 }
 0x127   : > { %v583_v46 = vadd.f32 %v1186_v44, %v1462_v50  ;;  %v676_v48 = vmax.f32 %v580_v42, 0.0  ;;  %v692_v49 = vmax.f32 %v644_v43, 0.0 }
 0x128   : > { %v647_v47 = vadd.f32 %v1234_v45, %v1462_v50 }
 0x129   : > { %v677_v51 = vmax.f32 %v583_v46, 0.0  ;;  %v1187_v53 = vpop.f32.mrb[24].mxu0  ;;  %v1235_v54 = vpop.f32.mrb[24].mxu1 }
 0x12a   : > { %v693_v52 = vmax.f32 %v647_v47, 0.0  ;;  %v1188_v55 = vpop.f32.mrb[25].mxu0  ;;  %v1236_v56 = vpop.f32.mrb[25].mxu1 }
 0x12b   : > { %v1068_v57 = vpack.c.bf16 %v677_v51, %v676_v48  ;;  %v1189_v59 = vadd.f32 %v1188_v55, %v1187_v53  ;;  %v1237_v60 = vadd.f32 %v1236_v56, %v1235_v54  ;;  %v1190_v61 = vpop.f32.mrb[26].mxu0  ;;  %v1238_v62 = vpop.f32.mrb[26].mxu1 }
 0x12c   : > { %v1108_v58 = vpack.c.bf16 %v693_v52, %v692_v49  ;;  %v1191_v63 = vpop.f32.mrb[27].mxu0  ;;  %v1239_v0 = vpop.f32.mrb[27].mxu1 }
 0x12d   : > { %1124 = vst [vmem:[%s1472_s4 + $0x28] sm:$0xff] %v1068_v57   ;;  %v588_v1 = vadd.f32 %v1189_v59, %v1462_v50  ;;  %v652_v2 = vadd.f32 %v1237_v60, %v1462_v50  ;;  %v1192_v3 = vadd.f32 %v1191_v63, %v1190_v61  ;;  %v1240_v4 = vadd.f32 %v1239_v0, %v1238_v62 }
 0x12e   : > { %1132 = vst [vmem:[%s1472_s4 + $0x68] sm:$0xff] %v1108_v58  }
 0x12f   : > { %v591_v5 = vadd.f32 %v1192_v3, %v1462_v50  ;;  %v655_v6 = vadd.f32 %v1240_v4, %v1462_v50  ;;  %v678_v7 = vmax.f32 %v588_v1, 0.0  ;;  %v694_v8 = vmax.f32 %v652_v2, 0.0 }
 0x131   : > { %v679_v9 = vmax.f32 %v591_v5, 0.0  ;;  %v695_v10 = vmax.f32 %v655_v6, 0.0  ;;  %v1193_v11 = vpop.f32.mrb[28].mxu0  ;;  %v1241_v12 = vpop.f32.mrb[28].mxu1 }
 0x132   : > { %v1194_v13 = vpop.f32.mrb[29].mxu0  ;;  %v1242_v14 = vpop.f32.mrb[29].mxu1 }
 0x133   : > { %v1073_v15 = vpack.c.bf16 %v679_v9, %v678_v7  ;;  %v1113_v16 = vpack.c.bf16 %v695_v10, %v694_v8  ;;  %v1195_v17 = vadd.f32 %v1194_v13, %v1193_v11  ;;  %v1243_v18 = vadd.f32 %v1242_v14, %v1241_v12  ;;  %v1196_v19 = vpop.f32.mrb[30].mxu0  ;;  %v1244_v20 = vpop.f32.mrb[30].mxu1 }
 0x134   : > { %v1197_v21 = vpop.f32.mrb[31].mxu0  ;;  %v1245_v22 = vpop.f32.mrb[31].mxu1 }
 0x135   : > { %1125 = vst [vmem:[%s1472_s4 + $0x30] sm:$0xff] %v1073_v15   ;;  %1133 = vst [vmem:[%s1472_s4 + $0x70] sm:$0xff] %v1113_v16   ;;  %v596_v23 = vadd.f32 %v1195_v17, %v1462_v50  ;;  %v660_v24 = vadd.f32 %v1243_v18, %v1462_v50  ;;  %v1198_v25 = vadd.f32 %v1197_v21, %v1196_v19 }
 0x136   : > { %v1246_v26 = vadd.f32 %v1245_v22, %v1244_v20 }
 0x137   : > { %v599_v27 = vadd.f32 %v1198_v25, %v1462_v50  ;;  %v680_v29 = vmax.f32 %v596_v23, 0.0  ;;  %v696_v30 = vmax.f32 %v660_v24, 0.0 }
 0x138   : > { %v663_v28 = vadd.f32 %v1246_v26, %v1462_v50 }
 0x139   : > { %v681_v31 = vmax.f32 %v599_v27, 0.0 }
 0x13a   : > { %v697_v32 = vmax.f32 %v663_v28, 0.0 }
 0x13b   : > { %v1078_v33 = vpack.c.bf16 %v681_v31, %v680_v29 }
 0x13c   : > { %v1118_v34 = vpack.c.bf16 %v697_v32, %v696_v30 }
 0x13d   : > { %1126 = vst [vmem:[%s1472_s4 + $0x38] sm:$0xff] %v1078_v33  }
 0x13e   : > { %1134 = vst [vmem:[%s1472_s4 + $0x78] sm:$0xff] %v1118_v34  }
 0x13f PF: > { %s13_s12 = sadd.s32 1, %s1341_s12  }
 0x140   : > { %p10_p4 = scmp.ge.s32.totalorder %s13_s12, 4  }
 0x142   :  { %12 = sbr.rel (!%p10_p4) target bundleno = 1 (0x1), region = 62 }

// kernel: _lambda_.13
= control target key start
LH: loop header
LB: loop body
LE: loop exit
PB: predicated region body
PF: predicated region fallthrough
CT: control target
= control target key end

     0   :  { %s610_s12 = smov 0   ;;  %s667_s0 = inlined_call_operand.vmem [shape: bf16[128,128], index: 0, kind: input, shape index: {}]   ;;  %s668_s1 = inlined_call_operand.vmem [shape: bf16[128,128], index: 1, kind: input, shape index: {}]   ;;  %s669_s2 = inlined_call_operand.vmem [shape: f32[1,128], index: 2, kind: input, shape index: {}]   ;;  %s670_s3 = inlined_call_operand.vmem [shape: bf16[128,128], index: 3, kind: output, shape index: {}]  }
   0x1 LB: > { %s447_s13 = sadd.s32 4294967295, %s588_s12   ;;  %p451_p0 = scmp.ge.s32.totalorder %s588_s12, 1  ;;  %s588_s12 = sphi %s610_s12, %s13_s12  }
   0x2   : > { %p138_p1 = scmp.lt.s32.totalorder %s588_s12, 3 }
   0x4   : > { %p139_p2 = pnand %p451_p0, %p138_p1 }
   0x5   : > { %v570_v0 = vld [vmem:[%s668_s1] sm:$0xff] (!%p139_p2)   ;;  %s452_s16 = sshll.u32 (!%p139_p2), %s447_s13, 3  ;;  %v571_v1 = vld [vmem:[%s668_s1 + $0x8] sm:$0xff] (!%p139_p2)   ;;  %v572_v2 = vld [vmem:[%s668_s1 + $0x10] sm:$0xff] (!%p139_p2)  }
   0x6   : > { %142 = sbr.rel (%p139_p2) target bundleno = 260 (0x104), region = 32  ;;  %p163_p3 = scmp.lt.s32.totalorder (!%p139_p2), %s452_s16, 15  ;;  %522 = vmatprep.subr.bf16.mxu0 (!%p139_p2), %v570_v0  ;;  %546 = vmatprep.subr.bf16.mxu1 (!%p139_p2), %v570_v0  ;;  %v573_v3 = vld [vmem:[%s668_s1 + $0x18] sm:$0xff] (!%p139_p2)   ;;  %v574_v6 = vld [vmem:[%s668_s1 + $0x20] sm:$0xff] (!%p139_p2)   ;;  %v575_v7 = vld [vmem:[%s668_s1 + $0x28] sm:$0xff] (!%p139_p2)  }
   0x7   : > { %523 = vmatpush3.bf16.msra.mxu0 (!%p139_p2), %v570_v0  ;;  %554 = vmatpush3.bf16.msra.mxu1 (!%p139_p2), %v570_v0  ;;  %v576_v8 = vld [vmem:[%s668_s1 + $0x30] sm:$0xff] (!%p139_p2)   ;;  %v577_v9 = vld [vmem:[%s668_s1 + $0x38] sm:$0xff] (!%p139_p2)   ;;  %v456_v12 = vld [vmem:[%s669_s2] ss:$0 sm:$0xff] (!%p139_p2) }
   0x8   : > { %524 = vmatprep.subr.bf16.mxu0 (!%p139_p2), %v571_v1  ;;  %547 = vmatprep.subr.bf16.mxu1 (!%p139_p2), %v571_v1 }
   0xb   : > { %525 = vmatpush3.bf16.msra.mxu0 (!%p139_p2), %v571_v1  ;;  %555 = vmatpush3.bf16.msra.mxu1 (!%p139_p2), %v571_v1 }
   0xc   : > { %526 = vmatprep.subr.bf16.mxu0 (!%p139_p2), %v572_v2  ;;  %548 = vmatprep.subr.bf16.mxu1 (!%p139_p2), %v572_v2 }
   0xd   : > { %s672_s16 = smov (!%p163_p3, %s452_s16), 15 }
   0xe   : > { %s453_s21 = sshll.u32 %s672_s16, 2 }
   0xf   : > { %s635_s24 = scalar_lea.vmem %s667_s0, %s453_s21  ;;  %527 = vmatpush3.bf16.msra.mxu0 %v572_v2  ;;  %556 = vmatpush3.bf16.msra.mxu1 %v572_v2  ;;  %s172_s13 = scalar_lea.vmem %s670_s3, %s453_s21 }
  0x10   : > { %v578_v4 = vld [vmem:[%s635_s24] sm:$0xff]   ;;  %v579_v5 = vld [vmem:[%s635_s24 + $0x10] sm:$0xff]   ;;  %528 = vmatprep.subr.bf16.mxu0 %v573_v3  ;;  %549 = vmatprep.subr.bf16.mxu1 %v573_v3  ;;  %v580_v10 = vld [vmem:[%s635_s24 + $0x8] sm:$0xff]  }
  0x11   : > { %538 = vmatprep.mubr.bf16.mxu0 %v578_v4  ;;  %542 = vmatprep.mubr.bf16.mxu1 %v579_v5  ;;  %v581_v11 = vld [vmem:[%s635_s24 + $0x18] sm:$0xff]  }
  0x13   : > { %529 = vmatpush3.bf16.msra.mxu0 %v573_v3  ;;  %557 = vmatpush3.bf16.msra.mxu1 %v573_v3 }
  0x14   : > { %530 = vmatprep.subr.bf16.mxu0 %v574_v6  ;;  %550 = vmatprep.subr.bf16.mxu1 %v574_v6 }
  0x17   : > { %531 = vmatpush3.bf16.msra.mxu0 %v574_v6  ;;  %558 = vmatpush3.bf16.msra.mxu1 %v574_v6 }
  0x18   : > { %532 = vmatprep.subr.bf16.mxu0 %v575_v7  ;;  %551 = vmatprep.subr.bf16.mxu1 %v575_v7 }
  0x1b   : > { %533 = vmatpush3.bf16.msra.mxu0 %v575_v7  ;;  %559 = vmatpush3.bf16.msra.mxu1 %v575_v7 }
  0x1c   : > { %534 = vmatprep.subr.bf16.mxu0 %v576_v8  ;;  %552 = vmatprep.subr.bf16.mxu1 %v576_v8 }
  0x1f   : > { %535 = vmatpush3.bf16.msra.mxu0 %v576_v8  ;;  %560 = vmatpush3.bf16.msra.mxu1 %v576_v8 }
  0x20   : > { %536 = vmatprep.subr.bf16.mxu0 %v577_v9  ;;  %553 = vmatprep.subr.bf16.mxu1 %v577_v9 }
  0x23   : > { %537 = vmatpush3.bf16.msra.mxu0 %v577_v9  ;;  %561 = vmatpush3.bf16.msra.mxu1 %v577_v9 }
  0x26   : > { %539 = vmatmul.mubr.bf16.vlgmr.msra.gmra.mrb[0].mxu0 %v580_v10  ;;  %543 = vmatmul.mubr.bf16.vlgmr.msra.gmra.mrb[0].mxu1 %v581_v11 }
  0xf9   : > { %v540_v13 = vpop.f32.mrb[0].mxu0  ;;  %v544_v14 = vpop.f32.mrb[0].mxu1 }
  0xfa   : > { %v321_v15 = vadd.f32 %v540_v13, %v456_v12  ;;  %v337_v16 = vadd.f32 %v544_v14, %v456_v12  ;;  %v312_v17 = vpop.f32.mrb[1].mxu0  ;;  %v328_v18 = vpop.f32.mrb[1].mxu1 }
  0xfb   : > { %v313_v19 = vadd.f32 %v456_v12, %v312_v17  ;;  %v329_v20 = vadd.f32 %v456_v12, %v328_v18  ;;  %v541_v21 = vpop.f32.mrb[2].mxu0  ;;  %v545_v22 = vpop.f32.mrb[2].mxu1 }
  0xfc   : > { %v324_v23 = vadd.f32 %v541_v21, %v456_v12  ;;  %v340_v24 = vadd.f32 %v545_v22, %v456_v12  ;;  %v315_v25 = vpop.f32.mrb[3].mxu0  ;;  %v331_v26 = vpop.f32.mrb[3].mxu1  ;;  %v345_v29 = vmax.f32 %v321_v15, 0.0  ;;  %v349_v30 = vmax.f32 %v337_v16, 0.0 }
  0xfd   : > { %v316_v27 = vadd.f32 %v456_v12, %v315_v25  ;;  %v332_v28 = vadd.f32 %v456_v12, %v331_v26  ;;  %v343_v33 = vmax.f32 %v313_v19, 0.0  ;;  %v347_v34 = vmax.f32 %v329_v20, 0.0 }
  0xfe   : > { %v346_v31 = vmax.f32 %v324_v23, 0.0  ;;  %v350_v32 = vmax.f32 %v340_v24, 0.0 }
  0xff   : > { %v344_v35 = vmax.f32 %v316_v27, 0.0  ;;  %v348_v36 = vmax.f32 %v332_v28, 0.0 }
 0x100   : > { %v495_v37 = vpack.c.bf16 %v346_v31, %v345_v29  ;;  %v505_v38 = vpack.c.bf16 %v350_v32, %v349_v30 }
 0x101   : > { %v490_v39 = vpack.c.bf16 %v344_v35, %v343_v33  ;;  %v500_v40 = vpack.c.bf16 %v348_v36, %v347_v34 }
 0x102   : > { %507 = vst [vmem:[%s172_s13 + $0x8] sm:$0xff] %v495_v37   ;;  %509 = vst [vmem:[%s172_s13 + $0x18] sm:$0xff] %v505_v38  }
 0x103   : > { %491 = vst [vmem:[%s172_s13] sm:$0xff] %v490_v39   ;;  %508 = vst [vmem:[%s172_s13 + $0x10] sm:$0xff] %v500_v40  }
 0x104 PF: > { %s13_s12 = sadd.s32 1, %s588_s12  }
 0x105   : > { %p10_p4 = scmp.ge.s32.totalorder %s13_s12, 4  }
 0x107   :  { %12 = sbr.rel (!%p10_p4) target bundleno = 1 (0x1), region = 62 }

// kernel: _lambda_.15
= control target key start
LH: loop header
LB: loop body
LE: loop exit
PB: predicated region body
PF: predicated region fallthrough
CT: control target
= control target key end

     0   :  { %s635_s12 = smov 0   ;;  %s723_s0 = inlined_call_operand.vmem [shape: bf16[128,128], index: 0, kind: input, shape index: {}]   ;;  %s724_s1 = inlined_call_operand.vmem [shape: bf16[128,256], index: 1, kind: input, shape index: {}]   ;;  %s725_s2 = inlined_call_operand.vmem [shape: f32[1,256], index: 2, kind: input, shape index: {}]   ;;  %s726_s3 = inlined_call_operand.vmem [shape: bf16[128,256], index: 3, kind: output, shape index: {}]  }
   0x1 LB: > { %s504_s13 = sadd.s32 4294967295, %s612_s12   ;;  %p508_p0 = scmp.ge.s32.totalorder %s612_s12, 1  ;;  %s612_s12 = sphi %s635_s12, %s13_s12  }
   0x2   : > { %p138_p1 = scmp.lt.s32.totalorder %s612_s12, 3 }
   0x4   : > { %p139_p2 = pnand %p508_p0, %p138_p1 }
   0x5   : > { %v578_v0 = vld [vmem:[%s724_s1 + $0x4] ss:$8 sps:$4 sm:$0xff] (!%p139_p2)   ;;  %s509_s16 = sshll.u32 (!%p139_p2), %s504_s13, 3  ;;  %v580_v1 = vld [vmem:[%s724_s1] ss:$8 sps:$4 sm:$0xff] (!%p139_p2)   ;;  %v614_v2 = vmov (!%p139_p2), 0   ;;  %v203_v21 = vlaneseq (!%p139_p2) }
   0x6   : > { %142 = sbr.rel (%p139_p2) target bundleno = 267 (0x10b), region = 32  ;;  %349 = vmatprep.mubr.bf16.mxu0 (!%p139_p2), %v614_v2  ;;  %369 = vmatprep.mubr.bf16.mxu1 (!%p139_p2), %v614_v2  ;;  %p164_p3 = scmp.lt.s32.totalorder (!%p139_p2), %s509_s16, 15  ;;  %v581_v3 = vld [vmem:[%s724_s1 + $0x14] ss:$8 sps:$4 sm:$0xff] (!%p139_p2)   ;;  %v583_v4 = vld [vmem:[%s724_s1 + $0x10] ss:$8 sps:$4 sm:$0xff] (!%p139_p2)  }
   0x7   : > { %317 = vmatprep.subr.bf16.mxu0 (!%p139_p2), %v578_v0  ;;  %553 = vmatprep.subr.bf16.mxu1 (!%p139_p2), %v578_v0  ;;  %v584_v5 = vld [vmem:[%s724_s1 + $0x24] ss:$8 sps:$4 sm:$0xff] (!%p139_p2)   ;;  %v586_v6 = vld [vmem:[%s724_s1 + $0x20] ss:$8 sps:$4 sm:$0xff] (!%p139_p2)   ;;  %v587_v7 = vld [vmem:[%s724_s1 + $0x34] ss:$8 sps:$4 sm:$0xff] (!%p139_p2)  }
   0x8   : > { %318 = vmatpush1.bf16.msra.mxu0 (!%p139_p2), %v580_v1  ;;  %561 = vmatpush1.bf16.msra.mxu1 (!%p139_p2), %v580_v1  ;;  %v589_v8 = vld [vmem:[%s724_s1 + $0x30] ss:$8 sps:$4 sm:$0xff] (!%p139_p2)   ;;  %v590_v9 = vld [vmem:[%s724_s1 + $0x44] ss:$8 sps:$4 sm:$0xff] (!%p139_p2)   ;;  %v592_v10 = vld [vmem:[%s724_s1 + $0x40] ss:$8 sps:$4 sm:$0xff] (!%p139_p2)  }
   0x9   : > { %319 = vmatprep.subr.bf16.mxu0 (!%p139_p2), %v581_v3  ;;  %554 = vmatprep.subr.bf16.mxu1 (!%p139_p2), %v581_v3  ;;  %v593_v11 = vld [vmem:[%s724_s1 + $0x54] ss:$8 sps:$4 sm:$0xff] (!%p139_p2)   ;;  %v595_v12 = vld [vmem:[%s724_s1 + $0x50] ss:$8 sps:$4 sm:$0xff] (!%p139_p2)   ;;  %v596_v13 = vld [vmem:[%s724_s1 + $0x64] ss:$8 sps:$4 sm:$0xff] (!%p139_p2)  }
   0xa   : > { %v598_v14 = vld [vmem:[%s724_s1 + $0x60] ss:$8 sps:$4 sm:$0xff] (!%p139_p2)   ;;  %v599_v15 = vld [vmem:[%s724_s1 + $0x74] ss:$8 sps:$4 sm:$0xff] (!%p139_p2)   ;;  %v601_v16 = vld [vmem:[%s724_s1 + $0x70] ss:$8 sps:$4 sm:$0xff] (!%p139_p2)  }
   0xb   : > { %v204_v22 = vshrl.u32 (!%p139_p2), %v203_v21, 7  ;;  %v201_v24 = vld [vmem:[%s725_s2] sm:$0x3] (!%p139_p2) }
   0xc   : > { %320 = vmatpush1.bf16.msra.mxu0 (!%p139_p2), %v583_v4  ;;  %562 = vmatpush1.bf16.msra.mxu1 (!%p139_p2), %v583_v4 }
   0xd   : > { %s728_s16 = smov (!%p164_p3, %s509_s16), 15  ;;  %321 = vmatprep.subr.bf16.mxu0 %v584_v5  ;;  %555 = vmatprep.subr.bf16.mxu1 %v584_v5  ;;  %v205_v23 = vsub.s32 0, %v204_v22  ;;  %v209_v25 = vsub.s32 1, %v204_v22 }
   0xe   : > { %s510_s25 = sshll.u32 %s728_s16, 2  ;;  %s544_s28 = sshll.u32 %s728_s16, 3 }
   0xf   : > { %s670_s5 = scalar_lea.vmem %s723_s0, %s510_s25  ;;  %v206_v26 = vrot.slane %v201_v24, %v205_v23  ;;  %v210_v27 = vrot.slane %v201_v24, %v209_v25  ;;  %s710_s4 = scalar_lea.vmem %s726_s3, %s544_s28 }
  0x10   : > { %322 = vmatpush1.bf16.msra.mxu0 %v586_v6  ;;  %563 = vmatpush1.bf16.msra.mxu1 %v586_v6  ;;  %v602_v17 = vld [vmem:[%s670_s5] sm:$0xff]   ;;  %v603_v18 = vld [vmem:[%s670_s5 + $0x10] sm:$0xff]   ;;  %v604_v19 = vld [vmem:[%s670_s5 + $0x8] sm:$0xff]  }
  0x11   : > { %323 = vmatprep.subr.bf16.mxu0 %v587_v7  ;;  %556 = vmatprep.subr.bf16.mxu1 %v587_v7  ;;  %v605_v20 = vld [vmem:[%s670_s5 + $0x18] sm:$0xff]  }
  0x14   : > { %324 = vmatpush1.bf16.msra.mxu0 %v589_v8  ;;  %564 = vmatpush1.bf16.msra.mxu1 %v589_v8 }
  0x15   : > { %325 = vmatprep.subr.bf16.mxu0 %v590_v9  ;;  %557 = vmatprep.subr.bf16.mxu1 %v590_v9 }
  0x18   : > { %326 = vmatpush1.bf16.msra.mxu0 %v592_v10  ;;  %565 = vmatpush1.bf16.msra.mxu1 %v592_v10 }
  0x19   : > { %327 = vmatprep.subr.bf16.mxu0 %v593_v11  ;;  %558 = vmatprep.subr.bf16.mxu1 %v593_v11 }
  0x1c   : > { %328 = vmatpush1.bf16.msra.mxu0 %v595_v12  ;;  %566 = vmatpush1.bf16.msra.mxu1 %v595_v12 }
  0x1d   : > { %329 = vmatprep.subr.bf16.mxu0 %v596_v13  ;;  %559 = vmatprep.subr.bf16.mxu1 %v596_v13 }
  0x20   : > { %330 = vmatpush1.bf16.msra.mxu0 %v598_v14  ;;  %567 = vmatpush1.bf16.msra.mxu1 %v598_v14 }
  0x21   : > { %331 = vmatprep.subr.bf16.mxu0 %v599_v15  ;;  %560 = vmatprep.subr.bf16.mxu1 %v599_v15 }
  0x24   : > { %332 = vmatpush1.bf16.msra.mxu0 %v601_v16  ;;  %568 = vmatpush1.bf16.msra.mxu1 %v601_v16 }
  0x27   : > { %350 = vmatmul.mubr.bf16.vlgmr.msra.gmra.mrb[0].mxu0 %v602_v17  ;;  %370 = vmatmul.mubr.bf16.vlgmr.msra.gmra.mrb[0].mxu1 %v603_v18 }
  0x28   : > { %359 = vmatprep.mubr.bf16.mxu0 %v614_v2  ;;  %379 = vmatprep.mubr.bf16.mxu1 %v614_v2 }
  0x2f   : > { %360 = vmatmul.mubr.bf16.gmra.mrb[4].mxu0 %v604_v19  ;;  %380 = vmatmul.mubr.bf16.gmra.mrb[4].mxu1 %v605_v20 }
  0xfa   : > { %v351_v28 = vpop.f32.mrb[0].mxu0  ;;  %v371_v29 = vpop.f32.mrb[0].mxu1 }
  0xfb   : > { %v352_v30 = vadd.f32 %v351_v28, %v206_v26  ;;  %v372_v31 = vadd.f32 %v371_v29, %v206_v26  ;;  %v353_v32 = vpop.f32.mrb[1].mxu0  ;;  %v373_v33 = vpop.f32.mrb[1].mxu1 }
  0xfc   : > { %v354_v34 = vadd.f32 %v353_v32, %v210_v27  ;;  %v374_v35 = vadd.f32 %v373_v33, %v210_v27  ;;  %v355_v36 = vpop.f32.mrb[2].mxu0  ;;  %v375_v37 = vpop.f32.mrb[2].mxu1 }
  0xfd   : > { %v356_v38 = vadd.f32 %v355_v36, %v206_v26  ;;  %v376_v39 = vadd.f32 %v375_v37, %v206_v26  ;;  %v357_v40 = vpop.f32.mrb[3].mxu0  ;;  %v377_v41 = vpop.f32.mrb[3].mxu1 }
  0xfe   : > { %v545_v42 = vpack.c.bf16 %v354_v34, %v352_v30  ;;  %v549_v43 = vpack.c.bf16 %v374_v35, %v372_v31  ;;  %v358_v44 = vadd.f32 %v357_v40, %v210_v27  ;;  %v378_v45 = vadd.f32 %v377_v41, %v210_v27 }
 0x100   : > { %438 = vst [vmem:[%s710_s4] sm:$0xff] %v545_v42  ;;  %442 = vst [vmem:[%s710_s4 + $0x20] sm:$0xff] %v549_v43  ;;  %v546_v46 = vpack.c.bf16 %v358_v44, %v356_v38  ;;  %v550_v47 = vpack.c.bf16 %v378_v45, %v376_v39 }
 0x102   : > { %439 = vst [vmem:[%s710_s4 + $0x8] sm:$0xff] %v546_v46  ;;  %443 = vst [vmem:[%s710_s4 + $0x28] sm:$0xff] %v550_v47  ;;  %v361_v48 = vpop.f32.mrb[4].mxu0  ;;  %v381_v49 = vpop.f32.mrb[4].mxu1 }
 0x103   : > { %v362_v50 = vadd.f32 %v361_v48, %v206_v26  ;;  %v382_v51 = vadd.f32 %v381_v49, %v206_v26  ;;  %v363_v52 = vpop.f32.mrb[5].mxu0  ;;  %v383_v53 = vpop.f32.mrb[5].mxu1 }
 0x104   : > { %v364_v54 = vadd.f32 %v363_v52, %v210_v27  ;;  %v384_v55 = vadd.f32 %v383_v53, %v210_v27  ;;  %v365_v56 = vpop.f32.mrb[6].mxu0  ;;  %v385_v57 = vpop.f32.mrb[6].mxu1 }
 0x105   : > { %v366_v58 = vadd.f32 %v365_v56, %v206_v26  ;;  %v386_v59 = vadd.f32 %v385_v57, %v206_v26  ;;  %v367_v60 = vpop.f32.mrb[7].mxu0  ;;  %v387_v61 = vpop.f32.mrb[7].mxu1 }
 0x106   : > { %v547_v62 = vpack.c.bf16 %v364_v54, %v362_v50  ;;  %v551_v63 = vpack.c.bf16 %v384_v55, %v382_v51  ;;  %v368_v0 = vadd.f32 %v367_v60, %v210_v27  ;;  %v388_v1 = vadd.f32 %v387_v61, %v210_v27 }
 0x108   : > { %440 = vst [vmem:[%s710_s4 + $0x10] sm:$0xff] %v547_v62  ;;  %444 = vst [vmem:[%s710_s4 + $0x30] sm:$0xff] %v551_v63  ;;  %v548_v2 = vpack.c.bf16 %v368_v0, %v366_v58  ;;  %v552_v3 = vpack.c.bf16 %v388_v1, %v386_v59 }
 0x10a   : > { %441 = vst [vmem:[%s710_s4 + $0x18] sm:$0xff] %v548_v2  ;;  %445 = vst [vmem:[%s710_s4 + $0x38] sm:$0xff] %v552_v3 }
 0x10b PF: > { %s13_s12 = sadd.s32 1, %s612_s12  }
 0x10c   : > { %p10_p4 = scmp.ge.s32.totalorder %s13_s12, 4  }
 0x10e   :  { %12 = sbr.rel (!%p10_p4) target bundleno = 1 (0x1), region = 62 }

// kernel: _lambda_.16
= control target key start
LH: loop header
LB: loop body
LE: loop exit
PB: predicated region body
PF: predicated region fallthrough
CT: control target
= control target key end

     0   :  { %s764_s15 = smov 0   ;;  %s897_s0 = inlined_call_operand.vmem [shape: bf16[128,128], index: 0, kind: input, shape index: {}]   ;;  %s898_s1 = inlined_call_operand.vmem [shape: bf16[128,256], index: 1, kind: input, shape index: {}]   ;;  %s899_s2 = inlined_call_operand.vmem [shape: f32[1,256], index: 2, kind: input, shape index: {}]   ;;  %s900_s3 = inlined_call_operand.vmem [shape: bf16[128,256], index: 3, kind: input, shape index: {}]   ;;  %s901_s4 = inlined_call_operand.vmem [shape: bf16[128,256], index: 4, kind: output, shape index: {}]  }
   0x1 LB: > { %s624_s16 = sadd.s32 4294967295, %s736_s15   ;;  %p628_p0 = scmp.ge.s32.totalorder %s736_s15, 1  ;;  %s736_s15 = sphi %s764_s15, %s14_s15  }
   0x2   : > { %p175_p1 = scmp.lt.s32.totalorder %s736_s15, 3 }
   0x4   : > { %p176_p2 = pnand %p628_p0, %p175_p1 }
   0x5   : > { %v702_v0 = vld [vmem:[%s898_s1 + $0x4] ss:$8 sps:$4 sm:$0xff] (!%p176_p2)   ;;  %s629_s19 = sshll.u32 (!%p176_p2), %s624_s16, 3  ;;  %v704_v1 = vld [vmem:[%s898_s1] ss:$8 sps:$4 sm:$0xff] (!%p176_p2)   ;;  %v738_v2 = vmov (!%p176_p2), 0   ;;  %v255_v21 = vlaneseq (!%p176_p2) }
   0x6   : > { %179 = sbr.rel (%p176_p2) target bundleno = 272 (0x110), region = 36  ;;  %401 = vmatprep.mubr.bf16.mxu0 (!%p176_p2), %v738_v2  ;;  %421 = vmatprep.mubr.bf16.mxu1 (!%p176_p2), %v738_v2  ;;  %p209_p3 = scmp.lt.s32.totalorder (!%p176_p2), %s629_s19, 15  ;;  %v705_v3 = vld [vmem:[%s898_s1 + $0x14] ss:$8 sps:$4 sm:$0xff] (!%p176_p2)   ;;  %v707_v4 = vld [vmem:[%s898_s1 + $0x10] ss:$8 sps:$4 sm:$0xff] (!%p176_p2)  }
   0x7   : > { %369 = vmatprep.subr.bf16.mxu0 (!%p176_p2), %v702_v0  ;;  %677 = vmatprep.subr.bf16.mxu1 (!%p176_p2), %v702_v0  ;;  %v708_v5 = vld [vmem:[%s898_s1 + $0x24] ss:$8 sps:$4 sm:$0xff] (!%p176_p2)   ;;  %v710_v6 = vld [vmem:[%s898_s1 + $0x20] ss:$8 sps:$4 sm:$0xff] (!%p176_p2)   ;;  %v711_v7 = vld [vmem:[%s898_s1 + $0x34] ss:$8 sps:$4 sm:$0xff] (!%p176_p2)  }
   0x8   : > { %370 = vmatpush1.bf16.msra.mxu0 (!%p176_p2), %v704_v1  ;;  %685 = vmatpush1.bf16.msra.mxu1 (!%p176_p2), %v704_v1  ;;  %v713_v8 = vld [vmem:[%s898_s1 + $0x30] ss:$8 sps:$4 sm:$0xff] (!%p176_p2)   ;;  %v714_v9 = vld [vmem:[%s898_s1 + $0x44] ss:$8 sps:$4 sm:$0xff] (!%p176_p2)   ;;  %v716_v10 = vld [vmem:[%s898_s1 + $0x40] ss:$8 sps:$4 sm:$0xff] (!%p176_p2)  }
   0x9   : > { %371 = vmatprep.subr.bf16.mxu0 (!%p176_p2), %v705_v3  ;;  %678 = vmatprep.subr.bf16.mxu1 (!%p176_p2), %v705_v3  ;;  %v717_v11 = vld [vmem:[%s898_s1 + $0x54] ss:$8 sps:$4 sm:$0xff] (!%p176_p2)   ;;  %v719_v12 = vld [vmem:[%s898_s1 + $0x50] ss:$8 sps:$4 sm:$0xff] (!%p176_p2)   ;;  %v720_v13 = vld [vmem:[%s898_s1 + $0x64] ss:$8 sps:$4 sm:$0xff] (!%p176_p2)  }
   0xa   : > { %v722_v14 = vld [vmem:[%s898_s1 + $0x60] ss:$8 sps:$4 sm:$0xff] (!%p176_p2)   ;;  %v723_v15 = vld [vmem:[%s898_s1 + $0x74] ss:$8 sps:$4 sm:$0xff] (!%p176_p2)   ;;  %v725_v16 = vld [vmem:[%s898_s1 + $0x70] ss:$8 sps:$4 sm:$0xff] (!%p176_p2)  }
   0xb   : > { %v256_v22 = vshrl.u32 (!%p176_p2), %v255_v21, 7  ;;  %v253_v24 = vld [vmem:[%s899_s2] sm:$0x3] (!%p176_p2) }
   0xc   : > { %372 = vmatpush1.bf16.msra.mxu0 (!%p176_p2), %v707_v4  ;;  %686 = vmatpush1.bf16.msra.mxu1 (!%p176_p2), %v707_v4 }
   0xd   : > { %s903_s19 = smov (!%p209_p3, %s629_s19), 15  ;;  %373 = vmatprep.subr.bf16.mxu0 %v708_v5  ;;  %679 = vmatprep.subr.bf16.mxu1 %v708_v5  ;;  %v257_v23 = vsub.s32 0, %v256_v22  ;;  %v261_v25 = vsub.s32 1, %v256_v22 }
   0xe   : > { %s630_s28 = sshll.u32 %s903_s19, 2  ;;  %s667_s30 = sshll.u32 %s903_s19, 3 }
   0xf   : > { %s799_s9 = scalar_lea.vmem %s897_s0, %s630_s28  ;;  %s838_s7 = scalar_lea.vmem %s900_s3, %s667_s30  ;;  %v845_v28 = vrot.slane %v253_v24, %v257_v23  ;;  %v849_v31 = vrot.slane %v253_v24, %v261_v25 }
  0x10   : > { %374 = vmatpush1.bf16.msra.mxu0 %v710_v6  ;;  %687 = vmatpush1.bf16.msra.mxu1 %v710_v6  ;;  %v726_v17 = vld [vmem:[%s799_s9] sm:$0xff]   ;;  %v727_v18 = vld [vmem:[%s799_s9 + $0x10] sm:$0xff]   ;;  %v728_v19 = vld [vmem:[%s799_s9 + $0x8] sm:$0xff]   ;;  %s876_s12 = scalar_lea.vmem %s901_s4, %s667_s30 }
  0x11   : > { %375 = vmatprep.subr.bf16.mxu0 %v711_v7  ;;  %680 = vmatprep.subr.bf16.mxu1 %v711_v7  ;;  %v729_v20 = vld [vmem:[%s799_s9 + $0x18] sm:$0xff]   ;;  %v442_v26 = vld [vmem:[%s838_s7] sm:$0xff]  ;;  %v443_v29 = vld [vmem:[%s838_s7 + $0x8] sm:$0xff] }
  0x12   : > { %v446_v27 = vld [vmem:[%s838_s7 + $0x20] sm:$0xff]  ;;  %v447_v30 = vld [vmem:[%s838_s7 + $0x28] sm:$0xff]  ;;  %v852_v32 = vld [vmem:[%s838_s7 + $0x10] sm:$0xff]  ;;  %v450_v34 = vunpack.c.l.bf16 %v442_v26  ;;  %v451_v36 = vunpack.c.h.bf16 %v442_v26  ;;  %v452_v40 = vunpack.c.l.bf16 %v443_v29  ;;  %v453_v42 = vunpack.c.h.bf16 %v443_v29 }
  0x13   : > { %v855_v33 = vld [vmem:[%s838_s7 + $0x30] sm:$0xff]  ;;  %v458_v35 = vunpack.c.l.bf16 %v446_v27  ;;  %v459_v37 = vunpack.c.h.bf16 %v446_v27  ;;  %v460_v41 = vunpack.c.l.bf16 %v447_v30  ;;  %v461_v43 = vunpack.c.h.bf16 %v447_v30  ;;  %v449_v3 = vld [vmem:[%s838_s7 + $0x38] sm:$0xff] }
  0x14   : > { %376 = vmatpush1.bf16.msra.mxu0 %v713_v8  ;;  %688 = vmatpush1.bf16.msra.mxu1 %v713_v8  ;;  %v454_v48 = vunpack.c.l.bf16 %v852_v32  ;;  %v462_v49 = vunpack.c.l.bf16 %v855_v33  ;;  %v455_v54 = vunpack.c.h.bf16 %v852_v32  ;;  %v463_v55 = vunpack.c.h.bf16 %v855_v33 }
  0x15   : > { %377 = vmatprep.subr.bf16.mxu0 %v714_v9  ;;  %681 = vmatprep.subr.bf16.mxu1 %v714_v9  ;;  %v465_v27 = vunpack.c.h.bf16 %v449_v3 }
  0x18   : > { %378 = vmatpush1.bf16.msra.mxu0 %v716_v10  ;;  %689 = vmatpush1.bf16.msra.mxu1 %v716_v10 }
  0x19   : > { %379 = vmatprep.subr.bf16.mxu0 %v717_v11  ;;  %682 = vmatprep.subr.bf16.mxu1 %v717_v11 }
  0x1c   : > { %380 = vmatpush1.bf16.msra.mxu0 %v719_v12  ;;  %690 = vmatpush1.bf16.msra.mxu1 %v719_v12 }
  0x1d   : > { %381 = vmatprep.subr.bf16.mxu0 %v720_v13  ;;  %683 = vmatprep.subr.bf16.mxu1 %v720_v13 }
  0x20   : > { %382 = vmatpush1.bf16.msra.mxu0 %v722_v14  ;;  %691 = vmatpush1.bf16.msra.mxu1 %v722_v14 }
  0x21   : > { %383 = vmatprep.subr.bf16.mxu0 %v723_v15  ;;  %684 = vmatprep.subr.bf16.mxu1 %v723_v15  ;;  %v464_v15 = vunpack.c.l.bf16 %v449_v3 }
  0x24   : > { %384 = vmatpush1.bf16.msra.mxu0 %v725_v16  ;;  %692 = vmatpush1.bf16.msra.mxu1 %v725_v16 }
  0x27   : > { %402 = vmatmul.mubr.bf16.vlgmr.msra.gmra.mrb[0].mxu0 %v726_v17  ;;  %422 = vmatmul.mubr.bf16.vlgmr.msra.gmra.mrb[0].mxu1 %v727_v18 }
  0x28   : > { %411 = vmatprep.mubr.bf16.mxu0 %v738_v2  ;;  %431 = vmatprep.mubr.bf16.mxu1 %v738_v2  ;;  %v445_v2 = vld [vmem:[%s838_s7 + $0x18] sm:$0xff] }
  0x29   : > { %v456_v14 = vunpack.c.l.bf16 %v445_v2  ;;  %v457_v26 = vunpack.c.h.bf16 %v445_v2 }
  0x2f   : > { %412 = vmatmul.mubr.bf16.gmra.mrb[4].mxu0 %v728_v19  ;;  %432 = vmatmul.mubr.bf16.gmra.mrb[4].mxu1 %v729_v20 }
  0xfa   : > { %v403_v38 = vpop.f32.mrb[0].mxu0  ;;  %v423_v39 = vpop.f32.mrb[0].mxu1 }
  0xfb   : > { %v404_v44 = vadd.f32 %v403_v38, %v845_v28  ;;  %v424_v45 = vadd.f32 %v423_v39, %v845_v28  ;;  %v405_v46 = vpop.f32.mrb[1].mxu0  ;;  %v425_v47 = vpop.f32.mrb[1].mxu1 }
  0xfc   : > { %v406_v50 = vadd.f32 %v405_v46, %v849_v31  ;;  %v426_v51 = vadd.f32 %v425_v47, %v849_v31  ;;  %v407_v52 = vpop.f32.mrb[2].mxu0  ;;  %v427_v53 = vpop.f32.mrb[2].mxu1 }
  0xfd   : > { %v466_v56 = vadd.f32 %v450_v34, %v404_v44  ;;  %v474_v57 = vadd.f32 %v458_v35, %v424_v45  ;;  %v408_v58 = vadd.f32 %v407_v52, %v845_v28  ;;  %v428_v59 = vadd.f32 %v427_v53, %v845_v28  ;;  %v409_v60 = vpop.f32.mrb[3].mxu0  ;;  %v429_v61 = vpop.f32.mrb[3].mxu1 }
  0xfe   : > { %v467_v62 = vadd.f32 %v451_v36, %v406_v50  ;;  %v475_v63 = vadd.f32 %v459_v37, %v426_v51  ;;  %v410_v0 = vadd.f32 %v409_v60, %v849_v31  ;;  %v430_v1 = vadd.f32 %v429_v61, %v849_v31 }
  0xff   : > { %v482_v4 = vmax.f32 %v466_v56, 0.0  ;;  %v490_v5 = vmax.f32 %v474_v57, 0.0  ;;  %v468_v6 = vadd.f32 %v452_v40, %v408_v58  ;;  %v476_v7 = vadd.f32 %v460_v41, %v428_v59 }
 0x100   : > { %v483_v8 = vmax.f32 %v467_v62, 0.0  ;;  %v491_v9 = vmax.f32 %v475_v63, 0.0  ;;  %v469_v10 = vadd.f32 %v453_v42, %v410_v0  ;;  %v477_v11 = vadd.f32 %v461_v43, %v430_v1 }
 0x101   : > { %v484_v12 = vmax.f32 %v468_v6, 0.0  ;;  %v492_v13 = vmax.f32 %v476_v7, 0.0 }
 0x102   : > { %v669_v16 = vpack.c.bf16 %v483_v8, %v482_v4  ;;  %v673_v17 = vpack.c.bf16 %v491_v9, %v490_v5  ;;  %v485_v18 = vmax.f32 %v469_v10, 0.0  ;;  %v493_v19 = vmax.f32 %v477_v11, 0.0  ;;  %v413_v20 = vpop.f32.mrb[4].mxu0  ;;  %v433_v21 = vpop.f32.mrb[4].mxu1 }
 0x103   : > { %v414_v22 = vadd.f32 %v413_v20, %v845_v28  ;;  %v434_v23 = vadd.f32 %v433_v21, %v845_v28  ;;  %v415_v24 = vpop.f32.mrb[5].mxu0  ;;  %v435_v25 = vpop.f32.mrb[5].mxu1 }
 0x104   : > { %546 = vst [vmem:[%s876_s12] sm:$0xff] %v669_v16  ;;  %550 = vst [vmem:[%s876_s12 + $0x20] sm:$0xff] %v673_v17  ;;  %v670_v29 = vpack.c.bf16 %v485_v18, %v484_v12  ;;  %v674_v30 = vpack.c.bf16 %v493_v19, %v492_v13  ;;  %v416_v32 = vadd.f32 %v415_v24, %v849_v31  ;;  %v417_v34 = vpop.f32.mrb[6].mxu0  ;;  %v437_v35 = vpop.f32.mrb[6].mxu1 }
 0x105   : > { %v436_v33 = vadd.f32 %v435_v25, %v849_v31  ;;  %v470_v36 = vadd.f32 %v454_v48, %v414_v22  ;;  %v478_v37 = vadd.f32 %v462_v49, %v434_v23  ;;  %v418_v38 = vadd.f32 %v417_v34, %v845_v28  ;;  %v419_v40 = vpop.f32.mrb[7].mxu0  ;;  %v439_v41 = vpop.f32.mrb[7].mxu1 }
 0x106   : > { %v438_v39 = vadd.f32 %v437_v35, %v845_v28  ;;  %547 = vst [vmem:[%s876_s12 + $0x8] sm:$0xff] %v670_v29  ;;  %551 = vst [vmem:[%s876_s12 + $0x28] sm:$0xff] %v674_v30  ;;  %v471_v42 = vadd.f32 %v455_v54, %v416_v32  ;;  %v420_v44 = vadd.f32 %v419_v40, %v849_v31 }
 0x107   : > { %v479_v43 = vadd.f32 %v463_v55, %v436_v33  ;;  %v440_v45 = vadd.f32 %v439_v41, %v849_v31  ;;  %v486_v46 = vmax.f32 %v470_v36, 0.0  ;;  %v494_v47 = vmax.f32 %v478_v37, 0.0 }
 0x108   : > { %v472_v48 = vadd.f32 %v456_v14, %v418_v38  ;;  %v480_v49 = vadd.f32 %v464_v15, %v438_v39  ;;  %v487_v50 = vmax.f32 %v471_v42, 0.0  ;;  %v473_v51 = vadd.f32 %v457_v26, %v420_v44 }
 0x109   : > { %v495_v28 = vmax.f32 %v479_v43, 0.0  ;;  %v481_v52 = vadd.f32 %v465_v27, %v440_v45 }
 0x10a   : > { %v488_v53 = vmax.f32 %v472_v48, 0.0  ;;  %v496_v56 = vmax.f32 %v480_v49, 0.0  ;;  %v671_v54 = vpack.c.bf16 %v487_v50, %v486_v46  ;;  %v489_v57 = vmax.f32 %v473_v51, 0.0 }
 0x10b   : > { %v675_v55 = vpack.c.bf16 %v495_v28, %v494_v47  ;;  %v497_v58 = vmax.f32 %v481_v52, 0.0 }
 0x10c   : > { %548 = vst [vmem:[%s876_s12 + $0x10] sm:$0xff] %v671_v54  ;;  %v672_v31 = vpack.c.bf16 %v489_v57, %v488_v53 }
 0x10d   : > { %552 = vst [vmem:[%s876_s12 + $0x30] sm:$0xff] %v675_v55  ;;  %v676_v59 = vpack.c.bf16 %v497_v58, %v496_v56 }
 0x10e   : > { %549 = vst [vmem:[%s876_s12 + $0x18] sm:$0xff] %v672_v31 }
 0x10f   : > { %553 = vst [vmem:[%s876_s12 + $0x38] sm:$0xff] %v676_v59 }
 0x110 PF: > { %s14_s15 = sadd.s32 1, %s736_s15  }
 0x111   : > { %p11_p4 = scmp.ge.s32.totalorder %s14_s15, 4  }
 0x113   :  { %13 = sbr.rel (!%p11_p4) target bundleno = 1 (0x1), region = 69 }

// kernel: _lambda_.17
= control target key start
LH: loop header
LB: loop body
LE: loop exit
PB: predicated region body
PF: predicated region fallthrough
CT: control target
= control target key end

     0   :  { %s727_s12 = smov 0   ;;  %s809_s0 = inlined_call_operand.vmem [shape: bf16[128,256], index: 0, kind: input, shape index: {}]   ;;  %s810_s1 = inlined_call_operand.vmem [shape: bf16[256,128], index: 1, kind: input, shape index: {}]   ;;  %s811_s2 = inlined_call_operand.vmem [shape: f32[1,128], index: 2, kind: input, shape index: {}]   ;;  %s812_s3 = inlined_call_operand.vmem [shape: bf16[128,128], index: 3, kind: output, shape index: {}]  }
   0x1 LB: > { %s530_s13 = sadd.s32 4294967295, %s705_s12   ;;  %p534_p0 = scmp.ge.s32.totalorder %s705_s12, 1  ;;  %s705_s12 = sphi %s727_s12, %s13_s12  }
   0x2   : > { %p139_p1 = scmp.lt.s32.totalorder %s705_s12, 3 }
   0x4   : > { %p140_p2 = pnand %p534_p0, %p139_p1 }
   0x5   : > { %v671_v0 = vld [vmem:[%s810_s1 + $0x40] sm:$0xff] (!%p140_p2)   ;;  %s535_s16 = sshll.u32 (!%p140_p2), %s530_s13, 3  ;;  %v673_v2 = vld [vmem:[%s810_s1 + $0x48] sm:$0xff] (!%p140_p2)   ;;  %v675_v4 = vld [vmem:[%s810_s1 + $0x50] sm:$0xff] (!%p140_p2)  }
   0x6   : > { %143 = sbr.rel (%p140_p2) target bundleno = 271 (0x10f), region = 32  ;;  %v672_v1 = vld [vmem:[%s810_s1] sm:$0xff] (!%p140_p2)   ;;  %607 = vmatprep.subr.bf16.mxu0 (!%p140_p2), %v671_v0  ;;  %647 = vmatprep.subr.bf16.mxu1 (!%p140_p2), %v671_v0  ;;  %v674_v3 = vld [vmem:[%s810_s1 + $0x8] sm:$0xff] (!%p140_p2)   ;;  %p165_p3 = scmp.lt.s32.totalorder (!%p140_p2), %s535_s16, 15  ;;  %v676_v5 = vld [vmem:[%s810_s1 + $0x10] sm:$0xff] (!%p140_p2)  }
   0x7   : > { %608 = vmatpush3.bf16.msra.mxu0 (!%p140_p2), %v672_v1  ;;  %655 = vmatpush3.bf16.msra.mxu1 (!%p140_p2), %v672_v1  ;;  %v677_v6 = vld [vmem:[%s810_s1 + $0x58] sm:$0xff] (!%p140_p2)   ;;  %v679_v8 = vld [vmem:[%s810_s1 + $0x60] sm:$0xff] (!%p140_p2)   ;;  %v681_v10 = vld [vmem:[%s810_s1 + $0x68] sm:$0xff] (!%p140_p2)  }
   0x8   : > { %609 = vmatprep.subr.bf16.mxu0 (!%p140_p2), %v673_v2  ;;  %648 = vmatprep.subr.bf16.mxu1 (!%p140_p2), %v673_v2  ;;  %v678_v7 = vld [vmem:[%s810_s1 + $0x18] sm:$0xff] (!%p140_p2)   ;;  %v680_v9 = vld [vmem:[%s810_s1 + $0x20] sm:$0xff] (!%p140_p2)   ;;  %v682_v13 = vld [vmem:[%s810_s1 + $0x28] sm:$0xff] (!%p140_p2)  }
   0x9   : > { %v683_v14 = vld [vmem:[%s810_s1 + $0x70] sm:$0xff] (!%p140_p2)   ;;  %v685_v16 = vld [vmem:[%s810_s1 + $0x78] sm:$0xff] (!%p140_p2)   ;;  %v540_v26 = vld [vmem:[%s811_s2] ss:$0 sm:$0xff] (!%p140_p2) }
   0xa   : > { %v684_v15 = vld [vmem:[%s810_s1 + $0x30] sm:$0xff] (!%p140_p2)   ;;  %v686_v17 = vld [vmem:[%s810_s1 + $0x38] sm:$0xff] (!%p140_p2)  }
   0xb   : > { %610 = vmatpush3.bf16.msra.mxu0 (!%p140_p2), %v674_v3  ;;  %656 = vmatpush3.bf16.msra.mxu1 (!%p140_p2), %v674_v3 }
   0xc   : > { %611 = vmatprep.subr.bf16.mxu0 (!%p140_p2), %v675_v4  ;;  %649 = vmatprep.subr.bf16.mxu1 (!%p140_p2), %v675_v4 }
   0xd   : > { %s814_s16 = smov (!%p165_p3, %s535_s16), 15 }
   0xe   : > { %s575_s4 = sshll.u32 %s814_s16, 3  ;;  %s539_s28 = sshll.u32 %s814_s16, 2 }
   0xf   : > { %612 = vmatpush3.bf16.msra.mxu0 %v676_v5  ;;  %657 = vmatpush3.bf16.msra.mxu1 %v676_v5  ;;  %s768_s9 = scalar_lea.vmem %s809_s0, %s575_s4  ;;  %s175_s4 = scalar_lea.vmem %s812_s3, %s539_s28 }
  0x10   : > { %613 = vmatprep.subr.bf16.mxu0 %v677_v6  ;;  %650 = vmatprep.subr.bf16.mxu1 %v677_v6  ;;  %v689_v11 = vld [vmem:[%s768_s9 + $0x4] ss:$8 sps:$4 sm:$0xff]   ;;  %v687_v18 = vld [vmem:[%s768_s9] ss:$8 sps:$4 sm:$0xff]   ;;  %v693_v20 = vld [vmem:[%s768_s9 + $0x14] ss:$8 sps:$4 sm:$0xff]  }
  0x11   : > { %v692_v12 = vld [vmem:[%s768_s9 + $0x24] ss:$8 sps:$4 sm:$0xff]   ;;  %393 = vmatprep.mubr.bf16.mxu0 %v689_v11  ;;  %v690_v19 = vld [vmem:[%s768_s9 + $0x20] ss:$8 sps:$4 sm:$0xff]   ;;  %v695_v21 = vld [vmem:[%s768_s9 + $0x34] ss:$8 sps:$4 sm:$0xff]  }
  0x12   : > { %409 = vmatprep.mubr.bf16.mxu1 %v692_v12  ;;  %v697_v22 = vld [vmem:[%s768_s9 + $0x10] ss:$8 sps:$4 sm:$0xff]  }
  0x13   : > { %614 = vmatpush3.bf16.msra.mxu0 %v678_v7  ;;  %658 = vmatpush3.bf16.msra.mxu1 %v678_v7  ;;  %v698_v23 = vld [vmem:[%s768_s9 + $0x30] ss:$8 sps:$4 sm:$0xff]  }
  0x14   : > { %615 = vmatprep.subr.bf16.mxu0 %v679_v8  ;;  %651 = vmatprep.subr.bf16.mxu1 %v679_v8 }
  0x17   : > { %616 = vmatpush3.bf16.msra.mxu0 %v680_v9  ;;  %659 = vmatpush3.bf16.msra.mxu1 %v680_v9 }
  0x18   : > { %617 = vmatprep.subr.bf16.mxu0 %v681_v10  ;;  %652 = vmatprep.subr.bf16.mxu1 %v681_v10 }
  0x1b   : > { %618 = vmatpush3.bf16.msra.mxu0 %v682_v13  ;;  %660 = vmatpush3.bf16.msra.mxu1 %v682_v13 }
  0x1c   : > { %619 = vmatprep.subr.bf16.mxu0 %v683_v14  ;;  %653 = vmatprep.subr.bf16.mxu1 %v683_v14 }
  0x1f   : > { %620 = vmatpush3.bf16.msra.mxu0 %v684_v15  ;;  %661 = vmatpush3.bf16.msra.mxu1 %v684_v15 }
  0x20   : > { %621 = vmatprep.subr.bf16.mxu0 %v685_v16  ;;  %654 = vmatprep.subr.bf16.mxu1 %v685_v16 }
  0x23   : > { %622 = vmatpush3.bf16.msra.mxu0 %v686_v17  ;;  %662 = vmatpush3.bf16.msra.mxu1 %v686_v17 }
  0x26   : > { %394 = vmatmul.mubr.bf16.vlgmr.msra.gmra.mrb[0].mxu0 %v687_v18  ;;  %410 = vmatmul.mubr.bf16.vlgmr.msra.gmra.mrb[0].mxu1 %v690_v19 }
  0x27   : > { %401 = vmatprep.mubr.bf16.mxu0 %v693_v20  ;;  %417 = vmatprep.mubr.bf16.mxu1 %v695_v21 }
  0x2e   : > { %402 = vmatmul.mubr.bf16.gmra.mrb[4].mxu0 %v697_v22  ;;  %418 = vmatmul.mubr.bf16.gmra.mrb[4].mxu1 %v698_v23 }
  0xf9   : > { %v623_v24 = vpop.f32.mrb[0].mxu0  ;;  %v635_v25 = vpop.f32.mrb[0].mxu1 }
  0xfa   : > { %v624_v27 = vpop.f32.mrb[1].mxu0  ;;  %v636_v28 = vpop.f32.mrb[1].mxu1 }
  0xfb   : > { %v625_v29 = vadd.f32 %v624_v27, %v623_v24  ;;  %v637_v30 = vadd.f32 %v636_v28, %v635_v25  ;;  %v626_v31 = vpop.f32.mrb[2].mxu0  ;;  %v638_v32 = vpop.f32.mrb[2].mxu1 }
  0xfc   : > { %v627_v33 = vpop.f32.mrb[3].mxu0  ;;  %v639_v34 = vpop.f32.mrb[3].mxu1 }
  0xfd   : > { %v396_v35 = vadd.f32 %v625_v29, %v540_v26  ;;  %v412_v36 = vadd.f32 %v637_v30, %v540_v26  ;;  %v628_v37 = vadd.f32 %v627_v33, %v626_v31  ;;  %v640_v38 = vadd.f32 %v639_v34, %v638_v32 }
  0xff   : > { %v399_v39 = vadd.f32 %v628_v37, %v540_v26  ;;  %v415_v40 = vadd.f32 %v640_v38, %v540_v26  ;;  %v426_v41 = vmax.f32 %v396_v35, 0.0  ;;  %v430_v42 = vmax.f32 %v412_v36, 0.0 }
 0x101   : > { %v427_v43 = vmax.f32 %v399_v39, 0.0  ;;  %v431_v44 = vmax.f32 %v415_v40, 0.0  ;;  %v629_v45 = vpop.f32.mrb[4].mxu0  ;;  %v641_v46 = vpop.f32.mrb[4].mxu1 }
 0x102   : > { %v630_v47 = vpop.f32.mrb[5].mxu0  ;;  %v642_v48 = vpop.f32.mrb[5].mxu1 }
 0x103   : > { %v587_v49 = vpack.c.bf16 %v427_v43, %v426_v41  ;;  %v597_v50 = vpack.c.bf16 %v431_v44, %v430_v42  ;;  %v631_v51 = vadd.f32 %v630_v47, %v629_v45  ;;  %v643_v52 = vadd.f32 %v642_v48, %v641_v46  ;;  %v632_v53 = vpop.f32.mrb[6].mxu0  ;;  %v644_v54 = vpop.f32.mrb[6].mxu1 }
 0x104   : > { %v633_v55 = vpop.f32.mrb[7].mxu0  ;;  %v645_v56 = vpop.f32.mrb[7].mxu1 }
 0x105   : > { %588 = vst [vmem:[%s175_s4] sm:$0xff] %v587_v49   ;;  %605 = vst [vmem:[%s175_s4 + $0x10] sm:$0xff] %v597_v50   ;;  %v404_v57 = vadd.f32 %v631_v51, %v540_v26  ;;  %v420_v58 = vadd.f32 %v643_v52, %v540_v26  ;;  %v634_v59 = vadd.f32 %v633_v55, %v632_v53 }
 0x106   : > { %v646_v60 = vadd.f32 %v645_v56, %v644_v54 }
 0x107   : > { %v407_v61 = vadd.f32 %v634_v59, %v540_v26  ;;  %v428_v63 = vmax.f32 %v404_v57, 0.0  ;;  %v432_v0 = vmax.f32 %v420_v58, 0.0 }
 0x108   : > { %v423_v62 = vadd.f32 %v646_v60, %v540_v26 }
 0x109   : > { %v429_v1 = vmax.f32 %v407_v61, 0.0 }
 0x10a   : > { %v433_v2 = vmax.f32 %v423_v62, 0.0 }
 0x10b   : > { %v592_v3 = vpack.c.bf16 %v429_v1, %v428_v63 }
 0x10c   : > { %v602_v4 = vpack.c.bf16 %v433_v2, %v432_v0 }
 0x10d   : > { %604 = vst [vmem:[%s175_s4 + $0x8] sm:$0xff] %v592_v3  }
 0x10e   : > { %606 = vst [vmem:[%s175_s4 + $0x18] sm:$0xff] %v602_v4  }
 0x10f PF: > { %s13_s12 = sadd.s32 1, %s705_s12  }
 0x110   : > { %p10_p4 = scmp.ge.s32.totalorder %s13_s12, 4  }
 0x112   :  { %12 = sbr.rel (!%p10_p4) target bundleno = 1 (0x1), region = 62 }

// kernel: _lambda_.14
= control target key start
LH: loop header
LB: loop body
LE: loop exit
PB: predicated region body
PF: predicated region fallthrough
CT: control target
= control target key end

     0   :  { %s1946_s12 = smov 0   ;;  %s2226_s0 = inlined_call_operand.vmem [shape: bf16[128,1152], index: 0, kind: input, shape index: {}]   ;;  %s2227_s1 = inlined_call_operand.vmem [shape: bf16[1152,128], index: 1, kind: input, shape index: {}]   ;;  %s2228_s2 = inlined_call_operand.vmem [shape: f32[1,128], index: 2, kind: input, shape index: {}]   ;;  %s2229_s3 = inlined_call_operand.vmem [shape: bf16[128,128], index: 3, kind: output, shape index: {}]  }
   0x1 LB: > { %s1414_s13 = sadd.s32 4294967295, %s1924_s12   ;;  %p1418_p0 = scmp.ge.s32.totalorder %s1924_s12, 1  ;;  %s1924_s12 = sphi %s1946_s12, %s13_s12  }
   0x2   : > { %p139_p1 = scmp.lt.s32.totalorder %s1924_s12, 3 }
   0x4   : > { %p140_p2 = pnand %p1418_p0, %p139_p1 }
   0x5   : > { %v1794_v0 = vld [vmem:[%s2227_s1 + $0x40] sm:$0xff] (!%p140_p2)   ;;  %v1798_v4 = vld [vmem:[%s2227_s1 + $0x48] sm:$0xff] (!%p140_p2)   ;;  %v1802_v8 = vld [vmem:[%s2227_s1 + $0x50] sm:$0xff] (!%p140_p2)   ;;  %s1419_s19 = sshll.u32 (!%p140_p2), %s1414_s13, 3 }
   0x6   : > { %143 = sbr.rel (%p140_p2) target bundleno = 327 (0x147), region = 32  ;;  %v1795_v1 = vld [vmem:[%s2227_s1 + $0xc0] sm:$0xff] (!%p140_p2)   ;;  %1573 = vmatprep.subr.bf16.mxu0 (!%p140_p2), %v1794_v0  ;;  %v1799_v5 = vld [vmem:[%s2227_s1 + $0xc8] sm:$0xff] (!%p140_p2)   ;;  %v1803_v9 = vld [vmem:[%s2227_s1 + $0xd0] sm:$0xff] (!%p140_p2)   ;;  %p165_p3 = scmp.lt.s32.totalorder (!%p140_p2), %s1419_s19, 15 }
   0x7   : > { %v1796_v2 = vld [vmem:[%s2227_s1] sm:$0xff] (!%p140_p2)   ;;  %1613 = vmatprep.subr.bf16.mxu1 (!%p140_p2), %v1795_v1  ;;  %v1800_v6 = vld [vmem:[%s2227_s1 + $0x8] sm:$0xff] (!%p140_p2)   ;;  %v1804_v10 = vld [vmem:[%s2227_s1 + $0x10] sm:$0xff] (!%p140_p2)  }
   0x8   : > { %v1797_v3 = vld [vmem:[%s2227_s1 + $0x80] sm:$0xff] (!%p140_p2)   ;;  %1574 = vmatpush3.bf16.msra.mxu0 (!%p140_p2), %v1796_v2  ;;  %v1801_v7 = vld [vmem:[%s2227_s1 + $0x88] sm:$0xff] (!%p140_p2)   ;;  %v1805_v11 = vld [vmem:[%s2227_s1 + $0x90] sm:$0xff] (!%p140_p2)  }
   0x9   : > { %1614 = vmatpush3.bf16.msra.mxu1 (!%p140_p2), %v1797_v3  ;;  %1575 = vmatprep.subr.bf16.mxu0 (!%p140_p2), %v1798_v4  ;;  %v1806_v12 = vld [vmem:[%s2227_s1 + $0x58] sm:$0xff] (!%p140_p2)   ;;  %v1810_v16 = vld [vmem:[%s2227_s1 + $0x60] sm:$0xff] (!%p140_p2)   ;;  %v1814_v20 = vld [vmem:[%s2227_s1 + $0x68] sm:$0xff] (!%p140_p2)  }
   0xa   : > { %1615 = vmatprep.subr.bf16.mxu1 (!%p140_p2), %v1799_v5  ;;  %v1807_v13 = vld [vmem:[%s2227_s1 + $0xd8] sm:$0xff] (!%p140_p2)   ;;  %v1811_v17 = vld [vmem:[%s2227_s1 + $0xe0] sm:$0xff] (!%p140_p2)   ;;  %v1815_v21 = vld [vmem:[%s2227_s1 + $0xe8] sm:$0xff] (!%p140_p2)  }
   0xb   : > { %v1808_v14 = vld [vmem:[%s2227_s1 + $0x18] sm:$0xff] (!%p140_p2)   ;;  %v1812_v18 = vld [vmem:[%s2227_s1 + $0x20] sm:$0xff] (!%p140_p2)   ;;  %v1816_v22 = vld [vmem:[%s2227_s1 + $0x28] sm:$0xff] (!%p140_p2)  }
   0xc   : > { %1576 = vmatpush3.bf16.msra.mxu0 (!%p140_p2), %v1800_v6  ;;  %v1809_v15 = vld [vmem:[%s2227_s1 + $0x98] sm:$0xff] (!%p140_p2)   ;;  %v1813_v19 = vld [vmem:[%s2227_s1 + $0xa0] sm:$0xff] (!%p140_p2)   ;;  %v1817_v23 = vld [vmem:[%s2227_s1 + $0xa8] sm:$0xff] (!%p140_p2)  }
   0xd   : > { %1616 = vmatpush3.bf16.msra.mxu1 %v1801_v7  ;;  %1577 = vmatprep.subr.bf16.mxu0 %v1802_v8  ;;  %s2231_s19 = smov (!%p165_p3, %s1419_s19), 15  ;;  %v1818_v24 = vld [vmem:[%s2227_s1 + $0x70] sm:$0xff]   ;;  %v1822_v28 = vld [vmem:[%s2227_s1 + $0x78] sm:$0xff]   ;;  %v1832_v36 = vld [vmem:[%s2227_s1 + $0x140] sm:$0xff]  }
   0xe   : > { %1617 = vmatprep.subr.bf16.mxu1 %v1803_v9  ;;  %v1819_v25 = vld [vmem:[%s2227_s1 + $0xf0] sm:$0xff]   ;;  %s1785_s16 = smul.u32 36, %s2231_s19  ;;  %v1823_v29 = vld [vmem:[%s2227_s1 + $0xf8] sm:$0xff]   ;;  %v1833_v37 = vld [vmem:[%s2227_s1 + $0x1c0] sm:$0xff]  }
   0xf   : > { %v1820_v26 = vld [vmem:[%s2227_s1 + $0x30] sm:$0xff]   ;;  %v1824_v30 = vld [vmem:[%s2227_s1 + $0x38] sm:$0xff]   ;;  %v1834_v38 = vld [vmem:[%s2227_s1 + $0x100] sm:$0xff]  }
  0x10   : > { %1578 = vmatpush3.bf16.msra.mxu0 %v1804_v10  ;;  %v1821_v27 = vld [vmem:[%s2227_s1 + $0xb0] sm:$0xff]   ;;  %s2052_s13 = scalar_lea.vmem %s2226_s0, %s1785_s16  ;;  %v1825_v31 = vld [vmem:[%s2227_s1 + $0xb8] sm:$0xff]   ;;  %v1835_v39 = vld [vmem:[%s2227_s1 + $0x180] sm:$0xff]  }
  0x11   : > { %1618 = vmatpush3.bf16.msra.mxu1 %v1805_v11  ;;  %1579 = vmatprep.subr.bf16.mxu0 %v1806_v12  ;;  %v1826_v32 = vld [vmem:[%s2052_s13] ss:$36 sps:$4 sm:$0xff]   ;;  %v1829_v34 = vld [vmem:[%s2052_s13 + $0x8] ss:$36 sps:$4 sm:$0xff]   ;;  %v1842_v45 = vld [vmem:[%s2052_s13 + $0x54] ss:$36 sps:$4 sm:$0xff]  }
  0x12   : > { %1619 = vmatprep.subr.bf16.mxu1 %v1807_v13  ;;  %v1828_v33 = vld [vmem:[%s2052_s13 + $0x4] ss:$36 sps:$4 sm:$0xff]   ;;  %v1831_v35 = vld [vmem:[%s2052_s13 + $0xc] ss:$36 sps:$4 sm:$0xff]   ;;  %v1850_v52 = vld [vmem:[%s2227_s1 + $0x158] sm:$0xff]  }
  0x13   : > { %1017 = vmatprep.mubr.bf16.mxu0 %v1828_v33  ;;  %1082 = vmatprep.mubr.bf16.mxu1 %v1831_v35  ;;  %v1836_v40 = vld [vmem:[%s2227_s1 + $0x148] sm:$0xff]   ;;  %v1845_v47 = vld [vmem:[%s2052_s13 + $0x50] ss:$36 sps:$4 sm:$0xff]   ;;  %v1851_v53 = vld [vmem:[%s2227_s1 + $0x1d8] sm:$0xff]  }
  0x14   : > { %1580 = vmatpush3.bf16.msra.mxu0 %v1808_v14  ;;  %v1837_v41 = vld [vmem:[%s2227_s1 + $0x1c8] sm:$0xff]   ;;  %v1846_v48 = vld [vmem:[%s2227_s1 + $0x150] sm:$0xff]   ;;  %v1852_v54 = vld [vmem:[%s2227_s1 + $0x118] sm:$0xff]  }
  0x15   : > { %1620 = vmatpush3.bf16.msra.mxu1 %v1809_v15  ;;  %1581 = vmatprep.subr.bf16.mxu0 %v1810_v16  ;;  %v1838_v42 = vld [vmem:[%s2227_s1 + $0x108] sm:$0xff]   ;;  %v1847_v49 = vld [vmem:[%s2227_s1 + $0x1d0] sm:$0xff]   ;;  %v1853_v55 = vld [vmem:[%s2227_s1 + $0x198] sm:$0xff]  }
  0x16   : > { %1621 = vmatprep.subr.bf16.mxu1 %v1811_v17  ;;  %v1839_v43 = vld [vmem:[%s2227_s1 + $0x188] sm:$0xff]   ;;  %v1848_v50 = vld [vmem:[%s2227_s1 + $0x110] sm:$0xff]   ;;  %v1856_v57 = vld [vmem:[%s2052_s13 + $0x9c] ss:$36 sps:$4 sm:$0xff]  }
  0x17   : > { %v1840_v44 = vld [vmem:[%s2052_s13 + $0x4c] ss:$36 sps:$4 sm:$0xff]   ;;  %v1854_v56 = vld [vmem:[%s2052_s13 + $0x94] ss:$36 sps:$4 sm:$0xff]   ;;  %v1860_v60 = vld [vmem:[%s2227_s1 + $0x160] sm:$0xff]  }
  0x18   : > { %1582 = vmatpush3.bf16.msra.mxu0 %v1812_v18  ;;  %v1844_v46 = vld [vmem:[%s2052_s13 + $0x48] ss:$36 sps:$4 sm:$0xff]   ;;  %v1849_v51 = vld [vmem:[%s2227_s1 + $0x190] sm:$0xff]   ;;  %v1859_v59 = vld [vmem:[%s2052_s13 + $0x98] ss:$36 sps:$4 sm:$0xff]  }
  0x19   : > { %1622 = vmatpush3.bf16.msra.mxu1 %v1813_v19  ;;  %1583 = vmatprep.subr.bf16.mxu0 %v1814_v20  ;;  %v1858_v58 = vld [vmem:[%s2052_s13 + $0x90] ss:$36 sps:$4 sm:$0xff]   ;;  %v1861_v61 = vld [vmem:[%s2227_s1 + $0x1e0] sm:$0xff]   ;;  %v1864_v0 = vld [vmem:[%s2227_s1 + $0x168] sm:$0xff]  }
  0x1a   : > { %1623 = vmatprep.subr.bf16.mxu1 %v1815_v21  ;;  %v1862_v62 = vld [vmem:[%s2227_s1 + $0x120] sm:$0xff]   ;;  %v1865_v1 = vld [vmem:[%s2227_s1 + $0x1e8] sm:$0xff]   ;;  %v1872_v6 = vld [vmem:[%s2052_s13 + $0xd8] ss:$36 sps:$4 sm:$0xff]  }
  0x1b   : > { %v1863_v63 = vld [vmem:[%s2227_s1 + $0x1a0] sm:$0xff]   ;;  %v1866_v2 = vld [vmem:[%s2227_s1 + $0x128] sm:$0xff]   ;;  %v1874_v8 = vld [vmem:[%s2227_s1 + $0x170] sm:$0xff]  }
  0x1c   : > { %1584 = vmatpush3.bf16.msra.mxu0 %v1816_v22  ;;  %v1867_v3 = vld [vmem:[%s2227_s1 + $0x1a8] sm:$0xff]   ;;  %v1868_v4 = vld [vmem:[%s2052_s13 + $0xdc] ss:$36 sps:$4 sm:$0xff]   ;;  %v1875_v9 = vld [vmem:[%s2227_s1 + $0x1f0] sm:$0xff]  }
  0x1d   : > { %1624 = vmatpush3.bf16.msra.mxu1 %v1817_v23  ;;  %1585 = vmatprep.subr.bf16.mxu0 %v1818_v24  ;;  %v1870_v5 = vld [vmem:[%s2052_s13 + $0xe4] ss:$36 sps:$4 sm:$0xff]   ;;  %v1876_v10 = vld [vmem:[%s2227_s1 + $0x130] sm:$0xff]   ;;  %v1878_v12 = vld [vmem:[%s2227_s1 + $0x178] sm:$0xff]  }
  0x1e   : > { %1625 = vmatprep.subr.bf16.mxu1 %v1819_v25  ;;  %v1873_v7 = vld [vmem:[%s2052_s13 + $0xe0] ss:$36 sps:$4 sm:$0xff]   ;;  %v1877_v11 = vld [vmem:[%s2227_s1 + $0x1b0] sm:$0xff]   ;;  %v1879_v13 = vld [vmem:[%s2227_s1 + $0x1f8] sm:$0xff]  }
  0x1f   : > { %v1880_v14 = vld [vmem:[%s2227_s1 + $0x138] sm:$0xff]   ;;  %v1882_v16 = vld [vmem:[%s2052_s13 + $0x10] ss:$36 sps:$4 sm:$0xff]   ;;  %v1888_v20 = vld [vmem:[%s2227_s1 + $0x200] sm:$0xff]  }
  0x20   : > { %1586 = vmatpush3.bf16.msra.mxu0 %v1820_v26  ;;  %v1881_v15 = vld [vmem:[%s2227_s1 + $0x1b8] sm:$0xff]   ;;  %v1889_v21 = vld [vmem:[%s2227_s1 + $0x208] sm:$0xff]   ;;  %v1895_v25 = vld [vmem:[%s2052_s13 + $0x60] ss:$36 sps:$4 sm:$0xff]  }
  0x21   : > { %1626 = vmatpush3.bf16.msra.mxu1 %v1821_v27  ;;  %1587 = vmatprep.subr.bf16.mxu0 %v1822_v28  ;;  %v1884_v17 = vld [vmem:[%s2052_s13 + $0x14] ss:$36 sps:$4 sm:$0xff]   ;;  %v1887_v19 = vld [vmem:[%s2052_s13 + $0x1c] ss:$36 sps:$4 sm:$0xff]   ;;  %v1892_v23 = vld [vmem:[%s2052_s13 + $0x64] ss:$36 sps:$4 sm:$0xff]  }
  0x22   : > { %1627 = vmatprep.subr.bf16.mxu1 %v1823_v29  ;;  %v1885_v18 = vld [vmem:[%s2052_s13 + $0x18] ss:$36 sps:$4 sm:$0xff]   ;;  %v1896_v26 = vld [vmem:[%s2227_s1 + $0x210] sm:$0xff]   ;;  %v1898_v27 = vld [vmem:[%s2052_s13 + $0xa4] ss:$36 sps:$4 sm:$0xff]  }
  0x23   : > { %v1890_v22 = vld [vmem:[%s2052_s13 + $0x5c] ss:$36 sps:$4 sm:$0xff]   ;;  %v1900_v28 = vld [vmem:[%s2052_s13 + $0xac] ss:$36 sps:$4 sm:$0xff]  }
  0x24   : > { %1588 = vmatpush3.bf16.msra.mxu0 %v1824_v30  ;;  %v1894_v24 = vld [vmem:[%s2052_s13 + $0x58] ss:$36 sps:$4 sm:$0xff]   ;;  %v1902_v30 = vld [vmem:[%s2052_s13 + $0xa0] ss:$36 sps:$4 sm:$0xff]   ;;  %v1906_v33 = vld [vmem:[%s2052_s13 + $0xec] ss:$36 sps:$4 sm:$0xff]  }
  0x25   : > { %1628 = vmatpush3.bf16.msra.mxu1 %v1825_v31  ;;  %1653 = vmatprep.subr.bf16.mxu0 %v1832_v36  ;;  %v1897_v29 = vld [vmem:[%s2227_s1 + $0x218] sm:$0xff]   ;;  %v1903_v31 = vld [vmem:[%s2052_s13 + $0xa8] ss:$36 sps:$4 sm:$0xff]  }
  0x26   : > { %1693 = vmatprep.subr.bf16.mxu1 %v1833_v37  ;;  %v1905_v35 = vld [vmem:[%s2227_s1 + $0x228] sm:$0xff]   ;;  %v1912_v37 = vld [vmem:[%s2227_s1 + $0x230] sm:$0xff]  }
  0x27   : > { %1018 = vmatmul.mubr.bf16.vlgmr.msra.gmra.mrb[0].mxu0 %v1826_v32  ;;  %v1904_v32 = vld [vmem:[%s2227_s1 + $0x220] sm:$0xff]   ;;  %v1910_v36 = vld [vmem:[%s2052_s13 + $0xe8] ss:$36 sps:$4 sm:$0xff]  }
  0x28   : > { %1083 = vmatmul.mubr.bf16.vlgmr.msra.gmra.mrb[0].mxu1 %v1829_v34  ;;  %1654 = vmatpush3.bf16.msra.mxu0 %v1834_v38  ;;  %v1908_v34 = vld [vmem:[%s2052_s13 + $0xf4] ss:$36 sps:$4 sm:$0xff]  }
  0x29   : > { %1694 = vmatpush3.bf16.msra.mxu1 %v1835_v39  ;;  %1655 = vmatprep.subr.bf16.mxu0 %v1836_v40  ;;  %v1911_v38 = vld [vmem:[%s2052_s13 + $0xf0] ss:$36 sps:$4 sm:$0xff]   ;;  %v1914_v39 = vld [vmem:[%s2052_s13 + $0x20] ss:$36 sps:$4 sm:$0xff]  }
  0x2a   : > { %1695 = vmatprep.subr.bf16.mxu1 %v1837_v41  ;;  %1025 = vmatprep.mubr.bf16.mxu0 %v1840_v44  ;;  %v1915_v40 = vld [vmem:[%s2052_s13 + $0xb0] ss:$36 sps:$4 sm:$0xff]   ;;  %v1913_v41 = vld [vmem:[%s2227_s1 + $0x238] sm:$0xff]  }
  0x2b   : > { %1090 = vmatprep.mubr.bf16.mxu1 %v1842_v45 }
  0x2c   : > { %1656 = vmatpush3.bf16.msra.mxu0 %v1838_v42  ;;  %v1916_v42 = vld [vmem:[%s2052_s13 + $0x68] ss:$36 sps:$4 sm:$0xff]  }
  0x2d   : > { %1696 = vmatpush3.bf16.msra.mxu1 %v1839_v43  ;;  %1657 = vmatprep.subr.bf16.mxu0 %v1846_v48  ;;  %v1917_v43 = vld [vmem:[%s2052_s13 + $0xf8] ss:$36 sps:$4 sm:$0xff]   ;;  %s1422_s13 = sshll.u32 %s2231_s19, 2 }
  0x2e   : > { %1697 = vmatprep.subr.bf16.mxu1 %v1847_v49  ;;  %s175_s20 = scalar_lea.vmem %s2229_s3, %s1422_s13 }
  0x2f   : > { %1026 = vmatmul.mubr.bf16.gmra.mrb[4].mxu0 %v1844_v46  ;;  %v1423_v46 = vld [vmem:[%s2228_s2] ss:$0 sm:$0xff] }
  0x30   : > { %1091 = vmatmul.mubr.bf16.gmra.mrb[4].mxu1 %v1845_v47  ;;  %1658 = vmatpush3.bf16.msra.mxu0 %v1848_v50 }
  0x31   : > { %1698 = vmatpush3.bf16.msra.mxu1 %v1849_v51  ;;  %1659 = vmatprep.subr.bf16.mxu0 %v1850_v52 }
  0x32   : > { %1699 = vmatprep.subr.bf16.mxu1 %v1851_v53  ;;  %1033 = vmatprep.mubr.bf16.mxu0 %v1854_v56 }
  0x33   : > { %1098 = vmatprep.mubr.bf16.mxu1 %v1856_v57 }
  0x34   : > { %1660 = vmatpush3.bf16.msra.mxu0 %v1852_v54 }
  0x35   : > { %1700 = vmatpush3.bf16.msra.mxu1 %v1853_v55  ;;  %1661 = vmatprep.subr.bf16.mxu0 %v1860_v60 }
  0x36   : > { %1701 = vmatprep.subr.bf16.mxu1 %v1861_v61 }
  0x37   : > { %1034 = vmatmul.mubr.bf16.gmra.mrb[8].mxu0 %v1858_v58 }
  0x38   : > { %1099 = vmatmul.mubr.bf16.gmra.mrb[8].mxu1 %v1859_v59  ;;  %1662 = vmatpush3.bf16.msra.mxu0 %v1862_v62 }
  0x39   : > { %1702 = vmatpush3.bf16.msra.mxu1 %v1863_v63  ;;  %1663 = vmatprep.subr.bf16.mxu0 %v1864_v0 }
  0x3a   : > { %1703 = vmatprep.subr.bf16.mxu1 %v1865_v1  ;;  %1041 = vmatprep.mubr.bf16.mxu0 %v1868_v4 }
  0x3b   : > { %1106 = vmatprep.mubr.bf16.mxu1 %v1870_v5 }
  0x3c   : > { %1664 = vmatpush3.bf16.msra.mxu0 %v1866_v2 }
  0x3d   : > { %1704 = vmatpush3.bf16.msra.mxu1 %v1867_v3  ;;  %1665 = vmatprep.subr.bf16.mxu0 %v1874_v8 }
  0x3e   : > { %1705 = vmatprep.subr.bf16.mxu1 %v1875_v9 }
  0x3f   : > { %1042 = vmatmul.mubr.bf16.gmra.mrb[12].mxu0 %v1872_v6 }
  0x40   : > { %1107 = vmatmul.mubr.bf16.gmra.mrb[12].mxu1 %v1873_v7  ;;  %1666 = vmatpush3.bf16.msra.mxu0 %v1876_v10 }
  0x41   : > { %1706 = vmatpush3.bf16.msra.mxu1 %v1877_v11  ;;  %1667 = vmatprep.subr.bf16.mxu0 %v1878_v12 }
  0x42   : > { %1707 = vmatprep.subr.bf16.mxu1 %v1879_v13  ;;  %1147 = vmatprep.mubr.bf16.mxu0 %v1884_v17 }
  0x43   : > { %1212 = vmatprep.mubr.bf16.mxu1 %v1887_v19 }
  0x44   : > { %1668 = vmatpush3.bf16.msra.mxu0 %v1880_v14 }
  0x45   : > { %1708 = vmatpush3.bf16.msra.mxu1 %v1881_v15  ;;  %1745 = vmatprep.subr.bf16.mxu0 %v1888_v20 }
  0x46   : > { %1769 = vmatprep.subr.bf16.mxu1 %v1888_v20 }
  0x47   : > { %1148 = vmatmul.mubr.bf16.vlgmr.msra.gmra.mrb[16].mxu0 %v1882_v16 }
  0x48   : > { %1213 = vmatmul.mubr.bf16.vlgmr.msra.gmra.mrb[16].mxu1 %v1885_v18  ;;  %1746 = vmatpush3.bf16.msra.mxu0 %v1888_v20 }
  0x49   : > { %1777 = vmatpush3.bf16.msra.mxu1 %v1888_v20  ;;  %1747 = vmatprep.subr.bf16.mxu0 %v1889_v21 }
  0x4a   : > { %1770 = vmatprep.subr.bf16.mxu1 %v1889_v21  ;;  %1155 = vmatprep.mubr.bf16.mxu0 %v1890_v22 }
  0x4b   : > { %1220 = vmatprep.mubr.bf16.mxu1 %v1892_v23 }
  0x4c   : > { %1748 = vmatpush3.bf16.msra.mxu0 %v1889_v21 }
  0x4d   : > { %1778 = vmatpush3.bf16.msra.mxu1 %v1889_v21  ;;  %1749 = vmatprep.subr.bf16.mxu0 %v1896_v26 }
  0x4e   : > { %1771 = vmatprep.subr.bf16.mxu1 %v1896_v26 }
  0x4f   : > { %1156 = vmatmul.mubr.bf16.gmra.mrb[20].mxu0 %v1894_v24 }
  0x50   : > { %1221 = vmatmul.mubr.bf16.gmra.mrb[20].mxu1 %v1895_v25  ;;  %1163 = vmatprep.mubr.bf16.mxu0 %v1898_v27 }
  0x51   : > { %1750 = vmatpush3.bf16.msra.mxu0 %v1896_v26  ;;  %1228 = vmatprep.mubr.bf16.mxu1 %v1900_v28 }
  0x52   : > { %1779 = vmatpush3.bf16.msra.mxu1 %v1896_v26  ;;  %1751 = vmatprep.subr.bf16.mxu0 %v1897_v29 }
  0x53   : > { %1772 = vmatprep.subr.bf16.mxu1 %v1897_v29 }
  0x55   : > { %1752 = vmatpush3.bf16.msra.mxu0 %v1897_v29 }
  0x56   : > { %1780 = vmatpush3.bf16.msra.mxu1 %v1897_v29  ;;  %1753 = vmatprep.subr.bf16.mxu0 %v1904_v32 }
  0x57   : > { %1164 = vmatmul.mubr.bf16.gmra.mrb[24].mxu0 %v1902_v30  ;;  %1773 = vmatprep.subr.bf16.mxu1 %v1904_v32 }
  0x58   : > { %1229 = vmatmul.mubr.bf16.gmra.mrb[24].mxu1 %v1903_v31  ;;  %1171 = vmatprep.mubr.bf16.mxu0 %v1906_v33 }
  0x59   : > { %1754 = vmatpush3.bf16.msra.mxu0 %v1904_v32  ;;  %1236 = vmatprep.mubr.bf16.mxu1 %v1908_v34 }
  0x5a   : > { %1781 = vmatpush3.bf16.msra.mxu1 %v1904_v32  ;;  %1755 = vmatprep.subr.bf16.mxu0 %v1905_v35 }
  0x5b   : > { %1774 = vmatprep.subr.bf16.mxu1 %v1905_v35 }
  0x5d   : > { %1756 = vmatpush3.bf16.msra.mxu0 %v1905_v35 }
  0x5e   : > { %1782 = vmatpush3.bf16.msra.mxu1 %v1905_v35  ;;  %1757 = vmatprep.subr.bf16.mxu0 %v1912_v37 }
  0x5f   : > { %1172 = vmatmul.mubr.bf16.gmra.mrb[28].mxu0 %v1910_v36  ;;  %1775 = vmatprep.subr.bf16.mxu1 %v1912_v37 }
  0x60   : > { %1237 = vmatmul.mubr.bf16.gmra.mrb[28].mxu1 %v1911_v38  ;;  %1761 = vmatprep.mubr.bf16.mxu0 %v1914_v39 }
  0x61   : > { %1758 = vmatpush3.bf16.msra.mxu0 %v1912_v37  ;;  %1765 = vmatprep.mubr.bf16.mxu1 %v1915_v40 }
  0x62   : > { %1783 = vmatpush3.bf16.msra.mxu1 %v1912_v37  ;;  %1759 = vmatprep.subr.bf16.mxu0 %v1913_v41 }
  0x63   : > { %1776 = vmatprep.subr.bf16.mxu1 %v1913_v41 }
  0x65   : > { %1760 = vmatpush3.bf16.msra.mxu0 %v1913_v41 }
  0x66   : > { %1784 = vmatpush3.bf16.msra.mxu1 %v1913_v41 }
  0x68   : > { %1762 = vmatmul.mubr.bf16.vlgmr.msra.gmra.mrb[32].mxu0 %v1916_v42 }
  0x69   : > { %1766 = vmatmul.mubr.bf16.vlgmr.msra.gmra.mrb[32].mxu1 %v1917_v43 }
  0xfa   : > { %v1589_v44 = vpop.f32.mrb[0].mxu0 }
  0xfb   : > { %v1629_v45 = vpop.f32.mrb[0].mxu1  ;;  %v1590_v47 = vpop.f32.mrb[1].mxu0 }
  0xfc   : > { %v1591_v48 = vadd.f32 %v1590_v47, %v1589_v44  ;;  %v1630_v49 = vpop.f32.mrb[1].mxu1  ;;  %v1592_v50 = vpop.f32.mrb[2].mxu0 }
  0xfd   : > { %v1631_v51 = vadd.f32 %v1630_v49, %v1629_v45  ;;  %v1632_v52 = vpop.f32.mrb[2].mxu1  ;;  %v1593_v53 = vpop.f32.mrb[3].mxu0 }
  0xfe   : > { %v1020_v54 = vadd.f32 %v1591_v48, %v1423_v46  ;;  %v1594_v55 = vadd.f32 %v1593_v53, %v1592_v50  ;;  %v1633_v56 = vpop.f32.mrb[3].mxu1 }
  0xff   : > { %v1634_v57 = vadd.f32 %v1633_v56, %v1632_v52 }
 0x100   : > { %v1085_v58 = vadd.f32 %v1631_v51, %v1020_v54  ;;  %v1023_v59 = vadd.f32 %v1594_v55, %v1423_v46 }
 0x102   : > { %v1088_v60 = vadd.f32 %v1634_v57, %v1023_v59  ;;  %v1595_v61 = vpop.f32.mrb[4].mxu0 }
 0x103   : > { %v1635_v62 = vpop.f32.mrb[4].mxu1  ;;  %v1596_v63 = vpop.f32.mrb[5].mxu0 }
 0x104   : > { %v1597_v0 = vadd.f32 %v1596_v63, %v1595_v61  ;;  %v1636_v1 = vpop.f32.mrb[5].mxu1  ;;  %v1598_v2 = vpop.f32.mrb[6].mxu0 }
 0x105   : > { %v1637_v3 = vadd.f32 %v1636_v1, %v1635_v62  ;;  %v1638_v4 = vpop.f32.mrb[6].mxu1  ;;  %v1599_v5 = vpop.f32.mrb[7].mxu0 }
 0x106   : > { %v1028_v6 = vadd.f32 %v1597_v0, %v1423_v46  ;;  %v1600_v7 = vadd.f32 %v1599_v5, %v1598_v2  ;;  %v1639_v8 = vpop.f32.mrb[7].mxu1 }
 0x107   : > { %v1640_v9 = vadd.f32 %v1639_v8, %v1638_v4 }
 0x108   : > { %v1093_v10 = vadd.f32 %v1637_v3, %v1028_v6  ;;  %v1031_v11 = vadd.f32 %v1600_v7, %v1423_v46 }
 0x10a   : > { %v1096_v12 = vadd.f32 %v1640_v9, %v1031_v11  ;;  %v1601_v13 = vpop.f32.mrb[8].mxu0 }
 0x10b   : > { %v1641_v14 = vpop.f32.mrb[8].mxu1  ;;  %v1602_v15 = vpop.f32.mrb[9].mxu0 }
 0x10c   : > { %v1603_v16 = vadd.f32 %v1602_v15, %v1601_v13  ;;  %v1642_v17 = vpop.f32.mrb[9].mxu1  ;;  %v1604_v18 = vpop.f32.mrb[10].mxu0 }
 0x10d   : > { %v1643_v19 = vadd.f32 %v1642_v17, %v1641_v14  ;;  %v1644_v20 = vpop.f32.mrb[10].mxu1  ;;  %v1605_v21 = vpop.f32.mrb[11].mxu0 }
 0x10e   : > { %v1036_v22 = vadd.f32 %v1603_v16, %v1423_v46  ;;  %v1606_v23 = vadd.f32 %v1605_v21, %v1604_v18  ;;  %v1645_v24 = vpop.f32.mrb[11].mxu1 }
 0x10f   : > { %v1646_v25 = vadd.f32 %v1645_v24, %v1644_v20 }
 0x110   : > { %v1101_v26 = vadd.f32 %v1643_v19, %v1036_v22  ;;  %v1039_v27 = vadd.f32 %v1606_v23, %v1423_v46 }
 0x112   : > { %v1104_v28 = vadd.f32 %v1646_v25, %v1039_v27  ;;  %v1607_v29 = vpop.f32.mrb[12].mxu0 }
 0x113   : > { %v1647_v30 = vpop.f32.mrb[12].mxu1  ;;  %v1608_v31 = vpop.f32.mrb[13].mxu0 }
 0x114   : > { %v1648_v32 = vpop.f32.mrb[13].mxu1  ;;  %v1609_v33 = vadd.f32 %v1608_v31, %v1607_v29  ;;  %v1610_v35 = vpop.f32.mrb[14].mxu0 }
 0x115   : > { %v1649_v34 = vadd.f32 %v1648_v32, %v1647_v30  ;;  %v1650_v36 = vpop.f32.mrb[14].mxu1  ;;  %v1611_v37 = vpop.f32.mrb[15].mxu0 }
 0x116   : > { %v1651_v38 = vpop.f32.mrb[15].mxu1  ;;  %v1044_v39 = vadd.f32 %v1609_v33, %v1423_v46  ;;  %v1612_v40 = vadd.f32 %v1611_v37, %v1610_v35 }
 0x117   : > { %v1652_v41 = vadd.f32 %v1651_v38, %v1650_v36 }
 0x118   : > { %v1109_v42 = vadd.f32 %v1649_v34, %v1044_v39  ;;  %v1047_v43 = vadd.f32 %v1612_v40, %v1423_v46 }
 0x11a   : > { %v1112_v44 = vadd.f32 %v1652_v41, %v1047_v43  ;;  %v1669_v45 = vpop.f32.mrb[16].mxu0 }
 0x11b   : > { %v1670_v47 = vpop.f32.mrb[17].mxu0  ;;  %v1709_v48 = vpop.f32.mrb[16].mxu1 }
 0x11c   : > { %v1671_v49 = vadd.f32 %v1670_v47, %v1669_v45  ;;  %v1672_v50 = vpop.f32.mrb[18].mxu0  ;;  %v1710_v51 = vpop.f32.mrb[17].mxu1 }
 0x11d   : > { %v1673_v52 = vpop.f32.mrb[19].mxu0  ;;  %v1711_v54 = vadd.f32 %v1710_v51, %v1709_v48  ;;  %v1712_v55 = vpop.f32.mrb[18].mxu1 }
 0x11e   : > { %v1150_v53 = vadd.f32 %v1671_v49, %v1085_v58  ;;  %v1674_v56 = vadd.f32 %v1673_v52, %v1672_v50  ;;  %v1713_v57 = vpop.f32.mrb[19].mxu1 }
 0x11f   : > { %v1714_v61 = vadd.f32 %v1713_v57, %v1712_v55 }
 0x120   : > { %v1153_v59 = vadd.f32 %v1674_v56, %v1088_v60  ;;  %v1215_v62 = vadd.f32 %v1711_v54, %v1150_v53 }
 0x122   : > { %v1675_v63 = vpop.f32.mrb[20].mxu0  ;;  %v1218_v0 = vadd.f32 %v1714_v61, %v1153_v59 }
 0x123   : > { %v1676_v1 = vpop.f32.mrb[21].mxu0  ;;  %v1715_v46 = vpop.f32.mrb[20].mxu1 }
 0x124   : > { %v1677_v2 = vadd.f32 %v1676_v1, %v1675_v63  ;;  %v1678_v3 = vpop.f32.mrb[22].mxu0  ;;  %v1716_v4 = vpop.f32.mrb[21].mxu1 }
 0x125   : > { %v1679_v5 = vpop.f32.mrb[23].mxu0  ;;  %v1717_v7 = vadd.f32 %v1716_v4, %v1715_v46  ;;  %v1718_v8 = vpop.f32.mrb[22].mxu1 }
 0x126   : > { %v1158_v6 = vadd.f32 %v1677_v2, %v1093_v10  ;;  %v1680_v9 = vadd.f32 %v1679_v5, %v1678_v3  ;;  %v1719_v58 = vpop.f32.mrb[23].mxu1 }
 0x127   : > { %v1720_v13 = vadd.f32 %v1719_v58, %v1718_v8 }
 0x128   : > { %v1161_v11 = vadd.f32 %v1680_v9, %v1096_v12  ;;  %v1223_v14 = vadd.f32 %v1717_v7, %v1158_v6 }
 0x12a   : > { %v1681_v15 = vpop.f32.mrb[24].mxu0  ;;  %v1226_v60 = vadd.f32 %v1720_v13, %v1161_v11 }
 0x12b   : > { %v1682_v16 = vpop.f32.mrb[25].mxu0  ;;  %v1721_v17 = vpop.f32.mrb[24].mxu1 }
 0x12c   : > { %v1683_v18 = vadd.f32 %v1682_v16, %v1681_v15  ;;  %v1684_v19 = vpop.f32.mrb[26].mxu0  ;;  %v1722_v20 = vpop.f32.mrb[25].mxu1 }
 0x12d   : > { %v1685_v21 = vpop.f32.mrb[27].mxu0  ;;  %v1723_v23 = vadd.f32 %v1722_v20, %v1721_v17  ;;  %v1724_v24 = vpop.f32.mrb[26].mxu1 }
 0x12e   : > { %v1166_v22 = vadd.f32 %v1683_v18, %v1101_v26  ;;  %v1686_v25 = vadd.f32 %v1685_v21, %v1684_v19  ;;  %v1725_v10 = vpop.f32.mrb[27].mxu1 }
 0x12f   : > { %v1726_v29 = vadd.f32 %v1725_v10, %v1724_v24 }
 0x130   : > { %v1169_v27 = vadd.f32 %v1686_v25, %v1104_v28  ;;  %v1231_v30 = vadd.f32 %v1723_v23, %v1166_v22 }
 0x132   : > { %v1687_v31 = vpop.f32.mrb[28].mxu0  ;;  %v1234_v12 = vadd.f32 %v1726_v29, %v1169_v27 }
 0x133   : > { %v1688_v32 = vpop.f32.mrb[29].mxu0  ;;  %v1727_v33 = vpop.f32.mrb[28].mxu1 }
 0x134   : > { %v1689_v34 = vadd.f32 %v1688_v32, %v1687_v31  ;;  %v1690_v35 = vpop.f32.mrb[30].mxu0  ;;  %v1728_v36 = vpop.f32.mrb[29].mxu1 }
 0x135   : > { %v1691_v37 = vpop.f32.mrb[31].mxu0  ;;  %v1729_v39 = vadd.f32 %v1728_v36, %v1727_v33  ;;  %v1730_v40 = vpop.f32.mrb[30].mxu1 }
 0x136   : > { %v1174_v38 = vadd.f32 %v1689_v34, %v1109_v42  ;;  %v1692_v26 = vadd.f32 %v1691_v37, %v1690_v35  ;;  %v1731_v41 = vpop.f32.mrb[31].mxu1 }
 0x137   : > { %v1732_v45 = vadd.f32 %v1731_v41, %v1730_v40 }
 0x138   : > { %v1177_v43 = vadd.f32 %v1692_v26, %v1112_v44  ;;  %v1239_v47 = vadd.f32 %v1729_v39, %v1174_v38 }
 0x13a   : > { %v1242_v28 = vadd.f32 %v1732_v45, %v1177_v43 }
 0x13b   : > { %v1763_v48 = vpop.f32.mrb[32].mxu0 }
 0x13c   : > { %v1288_v49 = vadd.f32 %v1763_v48, %v1223_v14  ;;  %v1767_v50 = vpop.f32.mrb[32].mxu1  ;;  %v1279_v51 = vpop.f32.mrb[33].mxu0 }
 0x13d   : > { %v1304_v52 = vadd.f32 %v1767_v50, %v1239_v47  ;;  %v1280_v53 = vadd.f32 %v1279_v51, %v1215_v62  ;;  %v1295_v54 = vpop.f32.mrb[33].mxu1  ;;  %v1764_v55 = vpop.f32.mrb[34].mxu0 }
 0x13e   : > { %v1296_v56 = vadd.f32 %v1295_v54, %v1231_v30  ;;  %v1291_v42 = vadd.f32 %v1764_v55, %v1226_v60  ;;  %v1768_v57 = vpop.f32.mrb[34].mxu1  ;;  %v1282_v59 = vpop.f32.mrb[35].mxu0  ;;  %v1312_v44 = vmax.f32 %v1288_v49, 0.0 }
 0x13f   : > { %v1307_v61 = vadd.f32 %v1768_v57, %v1242_v28  ;;  %v1283_v63 = vadd.f32 %v1282_v59, %v1218_v0  ;;  %v1298_v1 = vpop.f32.mrb[35].mxu1  ;;  %v1316_v3 = vmax.f32 %v1304_v52, 0.0  ;;  %v1310_v4 = vmax.f32 %v1280_v53, 0.0 }
 0x140   : > { %v1313_v46 = vmax.f32 %v1291_v42, 0.0  ;;  %v1299_v2 = vadd.f32 %v1298_v1, %v1234_v12  ;;  %v1314_v6 = vmax.f32 %v1296_v56, 0.0 }
 0x141   : > { %v1317_v62 = vmax.f32 %v1307_v61, 0.0  ;;  %v1311_v5 = vmax.f32 %v1283_v63, 0.0 }
 0x142   : > { %v1558_v7 = vpack.c.bf16 %v1313_v46, %v1312_v44  ;;  %v1315_v8 = vmax.f32 %v1299_v2, 0.0 }
 0x143   : > { %v1568_v9 = vpack.c.bf16 %v1317_v62, %v1316_v3  ;;  %v1553_v58 = vpack.c.bf16 %v1311_v5, %v1310_v4 }
 0x144   : > { %1570 = vst [vmem:[%s175_s20 + $0x8] sm:$0xff] %v1558_v7   ;;  %v1563_v11 = vpack.c.bf16 %v1315_v8, %v1314_v6 }
 0x145   : > { %1572 = vst [vmem:[%s175_s20 + $0x18] sm:$0xff] %v1568_v9   ;;  %1554 = vst [vmem:[%s175_s20] sm:$0xff] %v1553_v58  }
 0x146   : > { %1571 = vst [vmem:[%s175_s20 + $0x10] sm:$0xff] %v1563_v11  }
 0x147 PF: > { %s13_s12 = sadd.s32 1, %s1924_s12  }
 0x148   : > { %p10_p4 = scmp.ge.s32.totalorder %s13_s12, 4  }
 0x14a   :  { %12 = sbr.rel (!%p10_p4) target bundleno = 1 (0x1), region = 62 }

</bundles_post_ra>
